<compile_context>
chip_gen: v7x
topology: tpu7x:2x2x1
jax: 0.10.0
libtpu: 0.0.40
codegen_flags: <defaults>
</compile_context>

<pallas_src>
import math
import functools

import numpy as np

import jax
import jax.numpy as jnp
from jax import lax
from jax.experimental import pallas as pl
from jax.experimental.pallas import tpu as pltpu


# ----------------------------------------------------------------------------
# Constant-matrix builders (wrapper-side glue).  Only B depends on the weights.
# ----------------------------------------------------------------------------
def _shift_clamp(n, d):
    """(n, n) 0/1 matrix M with M[i, clamp(i+d)] = 1, i.e. (M @ v)[i] = v[clamp(i+d)]."""
    m = np.zeros((n, n), np.float32)
    for i in range(n):
        m[i, min(max(i + d, 0), n - 1)] = 1.0
    return m


def _build_S(n_batch, h):
    """Row-shift (replicate-clamped, per batch image) matrices for dy=-1,0,+1: (3, N*H, N*H)."""
    return np.stack(
        [np.kron(np.eye(n_batch, dtype=np.float32), _shift_clamp(h, d))
         for d in (-1, 0, 1)]).astype(np.float32)


def _build_B(k, w):
    """Per-dy lane-space conv matrices, (3, W*Cin, W*Cout), bf16.

    B_dy[(w', ci), (w, co)] = sum_dx K[dy+1, dx+1, ci, co] * [w' == clamp(w+dx)]
    i.e. the three horizontal taps plus the replicate padding in W as one matrix,
    so the whole conv contraction runs on the MXU.
    """
    outs = []
    for iy in range(3):
        b = None
        for ix, dx in enumerate((-1, 0, 1)):
            c = jnp.asarray(_shift_clamp(w, dx).T)      # C[w', w] = [w' == clamp(w+dx)]
            term = jnp.kron(c, k[iy, ix])               # (W*Cin, W*Cout)
            b = term if b is None else b + term
        outs.append(b)
    return jnp.stack(outs).astype(jnp.bfloat16)


def _build_P(n_batch, h):
    """Row (H) pooling selectors (2, N*H/2, N*H): P_a picks rows h = 2*ho + a."""
    ho = h // 2
    mats = []
    for a in (0, 1):
        f = np.zeros((ho, h), np.float32)
        for i in range(ho):
            f[i, 2 * i + a] = 1.0
        mats.append(np.kron(np.eye(n_batch, dtype=np.float32), f))
    return np.stack(mats).astype(np.float32)


def _build_Q(w, c):
    """Lane (W) pooling selectors (2, W*C, (W/2)*C): Q_b picks lane groups w = 2*wo + b."""
    wo = w // 2
    mats = []
    for b in (0, 1):
        e = np.zeros((w, wo), np.float32)
        for i in range(wo):
            e[2 * i + b, i] = 1.0
        mats.append(np.kron(e, np.eye(c, dtype=np.float32)))
    return np.stack(mats).astype(np.float32)


def _build_A(wo, c):
    """BN channel sum-and-broadcast matrix: A[(w,c0),(w',c1)] = [c0 == c1]."""
    return np.kron(np.ones((wo, wo), np.float32), np.eye(c, dtype=np.float32))


# ----------------------------------------------------------------------------
# Shared math: runs identically on plain jnp arrays (reference) and inside the
# Pallas kernel (S/B/P/Q/G/Bt may be VMEM Refs: they are only accessed through
# static integer / slice indexing; x and A are passed as loaded values).
# ----------------------------------------------------------------------------
def _mxu_dot(a, b):
    """bf16 x bf16 MXU matmul with f32 accumulation."""
    return jnp.dot(a.astype(jnp.bfloat16), b.astype(jnp.bfloat16),
                   preferred_element_type=jnp.float32)


def _cust_block_math(x, S1, B1, P, Q, S2, B2, B3, A, G, Bt, inv_count, eps):
    def conv3x3(act, S, B):
        acc = None
        for d in range(3):                     # dy = -1, 0, +1
            shifted = _mxu_dot(S[d], act)      # replicate-clamped row shift (exact 0/1 select)
            part = _mxu_dot(shifted, B[d])     # 3 horizontal taps + W replicate clamp
            acc = part if acc is None else acc + part
        return acc

    def bn_relu(y, i):
        # training-mode batch statistics (biased variance), f32 epilogue
        mean = jnp.sum(_mxu_dot(y, A), axis=0, keepdims=True) * inv_count      # (1, L)
        d = y - mean
        var = jnp.sum(_mxu_dot(d * d, A), axis=0, keepdims=True) * inv_count   # (1, L)
        yn = d * lax.rsqrt(var + eps)
        yn = yn * G[i:i + 1, :] + Bt[i:i + 1, :]
        return jnp.maximum(yn, 0.0)

    # ---- layer 1: conv -> 2x2 maxpool -> BN -> ReLU ----
    y = conv3x3(x, S1, B1)                                       # (N*H, W*Cout)
    mw = jnp.maximum(_mxu_dot(y, Q[0]), _mxu_dot(y, Q[1]))       # pool along W (lane groups)
    y1 = jnp.maximum(_mxu_dot(P[0], mw), _mxu_dot(P[1], mw))     # pool along H (rows)
    y1 = bn_relu(y1, 0)                                          # (N*Ho, Wo*Cout)

    # ---- residual block: two convLayers, then skip add (no ReLU after the add) ----
    y2 = bn_relu(conv3x3(y1, S2, B2), 1)
    y3 = bn_relu(conv3x3(y2, S2, B3), 2)
    return y3 + y1


# ----------------------------------------------------------------------------
# Fused Pallas kernel + wrapper
# ----------------------------------------------------------------------------
def _make_kernel(inv_count, eps):
    def kernel(x_ref, s1_ref, b1_ref, p_ref, q_ref, s2_ref, b2_ref, b3_ref,
               a_ref, g_ref, bt_ref, o_ref):
        o_ref[...] = _cust_block_math(
            x_ref[...], s1_ref, b1_ref, p_ref, q_ref, s2_ref, b2_ref, b3_ref,
            a_ref[...], g_ref, bt_ref, inv_count, eps)
    return kernel


def _prepare_operands(x_nchw, params):
    n, cin, h, w = x_nchw.shape
    cout = params["w1"].shape[-1]
    ho, wo = h // 2, w // 2

    # NCHW -> lane-dense 2D: rows = (n, h), lanes = (w, c)
    x2d = jnp.transpose(x_nchw, (0, 2, 3, 1)).reshape(n * h, w * cin)

    operands = (
        x2d,                                      # (N*H, W*Cin)          f32
        jnp.asarray(_build_S(n, h)),              # (3, N*H, N*H)         f32
        _build_B(params["w1"], w),                # (3, W*Cin, W*Cout)    bf16
        jnp.asarray(_build_P(n, h)),              # (2, N*Ho, N*H)        f32
        jnp.asarray(_build_Q(w, cout)),           # (2, W*Cout, Wo*Cout)  f32
        jnp.asarray(_build_S(n, ho)),             # (3, N*Ho, N*Ho)       f32
        _build_B(params["w2"], wo),               # (3, Wo*Cout, Wo*Cout) bf16
        _build_B(params["w3"], wo),               # (3, Wo*Cout, Wo*Cout) bf16
        jnp.asarray(_build_A(wo, cout)),          # (Wo*Cout, Wo*Cout)    f32
        jnp.stack([jnp.tile(params[f"g{i}"], wo) for i in (1, 2, 3)]),   # (3, Wo*Cout)
        jnp.stack([jnp.tile(params[f"b{i}"], wo) for i in (1, 2, 3)]),   # (3, Wo*Cout)
    )
    meta = dict(n=n, cin=cin, cout=cout, h=h, w=w, ho=ho, wo=wo,
                inv_count=1.0 / float(n * ho * wo))
    return operands, meta


def cust_block_forward(x_nchw, params, eps=1e-5):
    """custBlock forward: NCHW f32 in -> NCHW f32 out, one fused Pallas TPU kernel."""
    operands, meta = _prepare_operands(x_nchw, params)
    n, ho, wo, cout = meta["n"], meta["ho"], meta["wo"], meta["cout"]

    vspec = pl.BlockSpec(memory_space=pltpu.MemorySpace.VMEM)
    out2d = pl.pallas_call(
        _make_kernel(meta["inv_count"], eps),
        out_shape=jax.ShapeDtypeStruct((n * ho, wo * cout), jnp.float32),
        in_specs=[vspec] * len(operands),
        out_specs=vspec,
    )(*operands)

    # lane-dense (N*Ho, Wo*Cout) -> NCHW
    return jnp.transpose(out2d.reshape(n, ho, wo, cout), (0, 3, 1, 2))


# ----------------------------------------------------------------------------
# References for runtime validation
# ----------------------------------------------------------------------------
def cust_block_formulation_ref(x_nchw, params, eps=1e-5):
    """Identical math executed by XLA (tight check of the Pallas lowering)."""
    operands, meta = _prepare_operands(x_nchw, params)
    out2d = _cust_block_math(*operands, meta["inv_count"], eps)
    n, ho, wo, cout = meta["n"], meta["ho"], meta["wo"], meta["cout"]
    return jnp.transpose(out2d.reshape(n, ho, wo, cout), (0, 3, 1, 2))


def cust_block_f32_ref(x_nchw, params, eps=1e-5):
    """Faithful f32 implementation of the PyTorch module semantics (loose check:
    the kernel intentionally feeds bf16 operands to the MXU)."""
    def layer(x, k, g, b, pool):
        xp = jnp.pad(x, ((0, 0), (1, 1), (1, 1), (0, 0)), mode="edge")
        y = lax.conv_general_dilated(
            xp, k, (1, 1), "VALID",
            dimension_numbers=("NHWC", "HWIO", "NHWC"),
            precision=lax.Precision.HIGHEST)
        if pool:
            y = lax.reduce_window(y, -jnp.inf, lax.max,
                                  (1, 2, 2, 1), (1, 2, 2, 1), "VALID")
        m = jnp.mean(y, axis=(0, 1, 2), keepdims=True)
        v = jnp.mean((y - m) ** 2, axis=(0, 1, 2), keepdims=True)
        y = (y - m) * lax.rsqrt(v + eps) * g.reshape(1, 1, 1, -1) + b.reshape(1, 1, 1, -1)
        return jnp.maximum(y, 0.0)

    x = jnp.transpose(x_nchw, (0, 2, 3, 1))
    y = layer(x, params["w1"], params["g1"], params["b1"], True)
    skip = y
    y = layer(y, params["w2"], params["g2"], params["b2"], False)
    y = layer(y, params["w3"], params["g3"], params["b3"], False)
    return jnp.transpose(y + skip, (0, 3, 1, 2))


def init_params(key, cin, cout):
    def conv_w(k, ci, co):
        # PyTorch Conv2d default init: uniform(-1/sqrt(fan_in), 1/sqrt(fan_in)); HWIO layout
        bound = 1.0 / math.sqrt(ci * 9)
        return jax.random.uniform(k, (3, 3, ci, co), jnp.float32, -bound, bound)

    k1, k2, k3 = jax.random.split(key, 3)
    p = {"w1": conv_w(k1, cin, cout),
         "w2": conv_w(k2, cout, cout),
         "w3": conv_w(k3, cout, cout)}
    for i in (1, 2, 3):
        p[f"g{i}"] = jnp.ones((cout,), jnp.float32)    # BN gamma
        p[f"b{i}"] = jnp.zeros((cout,), jnp.float32)   # BN beta
    return p


# ----------------------------------------------------------------------------
if __name__ == "__main__":
    key = jax.random.PRNGKey(0)
    kx, kp = jax.random.split(key)

    N, Cin, Cout, H, W = 2, 4, 8, 16, 16
    x = jax.random.normal(kx, (N, Cin, H, W), jnp.float32)     # NCHW, like PyTorch
    params = init_params(kp, Cin, Cout)

    fwd = jax.jit(functools.partial(cust_block_forward, params=params))
    out = jax.block_until_ready(fwd(x))
    assert out.shape == (N, Cout, H // 2, W // 2), out.shape

    # 1) tight check: kernel vs the identical math run by XLA (validates the Pallas lowering)
    ref_same = jax.block_until_ready(cust_block_formulation_ref(x, params))
    err_same = float(jnp.max(jnp.abs(out - ref_same)))
    assert err_same < 2e-3, f"kernel vs matched-math reference, max abs diff {err_same}"

    # 2) loose check: kernel vs a faithful f32 implementation of the PyTorch module
    #    (difference comes only from the intentional bf16 MXU operands, compounded over 3 layers)
    ref_f32 = jax.block_until_ready(cust_block_f32_ref(x, params))
    err_f32 = float(jnp.max(jnp.abs(out - ref_f32)))
    assert err_f32 < 1e-1, f"kernel vs f32 reference, max abs diff {err_f32}"

    print("KERNEL_OK")
</pallas_src>

<mosaic_0001>
module attributes {stable_mosaic.version = 11 : i64} {
  func.func @kernel(%arg0: memref<32x64xf32, #tpu.memory_space<vmem>>, %arg1: memref<3x32x32xf32, #tpu.memory_space<vmem>>, %arg2: memref<3x64x128xbf16, #tpu.memory_space<vmem>>, %arg3: memref<2x16x32xf32, #tpu.memory_space<vmem>>, %arg4: memref<2x128x64xf32, #tpu.memory_space<vmem>>, %arg5: memref<3x16x16xf32, #tpu.memory_space<vmem>>, %arg6: memref<3x64x64xbf16, #tpu.memory_space<vmem>>, %arg7: memref<3x64x64xbf16, #tpu.memory_space<vmem>>, %arg8: memref<64x64xf32, #tpu.memory_space<vmem>>, %arg9: memref<3x64xf32, #tpu.memory_space<vmem>>, %arg10: memref<3x64xf32, #tpu.memory_space<vmem>>, %arg11: memref<16x64xf32, #tpu.memory_space<vmem>>) attributes {dimension_semantics = [], scalar_prefetch = 0 : i64, scratch_operands = 0 : i64, tpu.core_type = #tpu.core_type<tc>} {
    %c0 = arith.constant 0 : index
    %c0_0 = arith.constant 0 : index
    %0 = vector.load %arg0[%c0, %c0_0] : memref<32x64xf32, #tpu.memory_space<vmem>>, vector<32x64xf32>
    %c0_1 = arith.constant 0 : index
    %c0_2 = arith.constant 0 : index
    %1 = vector.load %arg8[%c0_1, %c0_2] : memref<64x64xf32, #tpu.memory_space<vmem>>, vector<64x64xf32>
    %c0_3 = arith.constant 0 : index
    %c0_4 = arith.constant 0 : index
    %c0_5 = arith.constant 0 : index
    %2 = vector.load %arg1[%c0_3, %c0_4, %c0_5] : memref<3x32x32xf32, #tpu.memory_space<vmem>>, vector<1x32x32xf32>
    %3 = vector.shape_cast %2 : vector<1x32x32xf32> to vector<32x32xf32>
    %4 = arith.truncf %3 : vector<32x32xf32> to vector<32x32xbf16>
    %5 = arith.truncf %0 : vector<32x64xf32> to vector<32x64xbf16>
    %cst = arith.constant dense<0.000000e+00> : vector<32x64xf32>
    %6 = tpu.matmul %4, %5, %cst {dimension_numbers = #tpu.dot_dimension_numbers<[1], [0], [0], [1], [0, 0, 1, 1], [], []>} : vector<32x32xbf16>, vector<32x64xbf16>, vector<32x64xf32> -> vector<32x64xf32>
    %c0_6 = arith.constant 0 : index
    %c0_7 = arith.constant 0 : index
    %c0_8 = arith.constant 0 : index
    %7 = vector.load %arg2[%c0_6, %c0_7, %c0_8] : memref<3x64x128xbf16, #tpu.memory_space<vmem>>, vector<1x64x128xbf16>
    %8 = vector.shape_cast %7 : vector<1x64x128xbf16> to vector<64x128xbf16>
    %9 = arith.truncf %6 : vector<32x64xf32> to vector<32x64xbf16>
    %cst_9 = arith.constant dense<0.000000e+00> : vector<32x128xf32>
    %10 = tpu.matmul %9, %8, %cst_9 {dimension_numbers = #tpu.dot_dimension_numbers<[1], [0], [0], [1], [0, 0, 1, 1], [], []>} : vector<32x64xbf16>, vector<64x128xbf16>, vector<32x128xf32> -> vector<32x128xf32>
    %c1 = arith.constant 1 : index
    %c0_10 = arith.constant 0 : index
    %c0_11 = arith.constant 0 : index
    %11 = vector.load %arg1[%c1, %c0_10, %c0_11] : memref<3x32x32xf32, #tpu.memory_space<vmem>>, vector<1x32x32xf32>
    %12 = vector.shape_cast %11 : vector<1x32x32xf32> to vector<32x32xf32>
    %13 = arith.truncf %12 : vector<32x32xf32> to vector<32x32xbf16>
    %14 = arith.truncf %0 : vector<32x64xf32> to vector<32x64xbf16>
    %cst_12 = arith.constant dense<0.000000e+00> : vector<32x64xf32>
    %15 = tpu.matmul %13, %14, %cst_12 {dimension_numbers = #tpu.dot_dimension_numbers<[1], [0], [0], [1], [0, 0, 1, 1], [], []>} : vector<32x32xbf16>, vector<32x64xbf16>, vector<32x64xf32> -> vector<32x64xf32>
    %c1_13 = arith.constant 1 : index
    %c0_14 = arith.constant 0 : index
    %c0_15 = arith.constant 0 : index
    %16 = vector.load %arg2[%c1_13, %c0_14, %c0_15] : memref<3x64x128xbf16, #tpu.memory_space<vmem>>, vector<1x64x128xbf16>
    %17 = vector.shape_cast %16 : vector<1x64x128xbf16> to vector<64x128xbf16>
    %18 = arith.truncf %15 : vector<32x64xf32> to vector<32x64xbf16>
    %cst_16 = arith.constant dense<0.000000e+00> : vector<32x128xf32>
    %19 = tpu.matmul %18, %17, %cst_16 {dimension_numbers = #tpu.dot_dimension_numbers<[1], [0], [0], [1], [0, 0, 1, 1], [], []>} : vector<32x64xbf16>, vector<64x128xbf16>, vector<32x128xf32> -> vector<32x128xf32>
    %20 = arith.addf %10, %19 : vector<32x128xf32>
    %c2 = arith.constant 2 : index
    %c0_17 = arith.constant 0 : index
    %c0_18 = arith.constant 0 : index
    %21 = vector.load %arg1[%c2, %c0_17, %c0_18] : memref<3x32x32xf32, #tpu.memory_space<vmem>>, vector<1x32x32xf32>
    %22 = vector.shape_cast %21 : vector<1x32x32xf32> to vector<32x32xf32>
    %23 = arith.truncf %22 : vector<32x32xf32> to vector<32x32xbf16>
    %24 = arith.truncf %0 : vector<32x64xf32> to vector<32x64xbf16>
    %cst_19 = arith.constant dense<0.000000e+00> : vector<32x64xf32>
    %25 = tpu.matmul %23, %24, %cst_19 {dimension_numbers = #tpu.dot_dimension_numbers<[1], [0], [0], [1], [0, 0, 1, 1], [], []>} : vector<32x32xbf16>, vector<32x64xbf16>, vector<32x64xf32> -> vector<32x64xf32>
    %c2_20 = arith.constant 2 : index
    %c0_21 = arith.constant 0 : index
    %c0_22 = arith.constant 0 : index
    %26 = vector.load %arg2[%c2_20, %c0_21, %c0_22] : memref<3x64x128xbf16, #tpu.memory_space<vmem>>, vector<1x64x128xbf16>
    %27 = vector.shape_cast %26 : vector<1x64x128xbf16> to vector<64x128xbf16>
    %28 = arith.truncf %25 : vector<32x64xf32> to vector<32x64xbf16>
    %cst_23 = arith.constant dense<0.000000e+00> : vector<32x128xf32>
    %29 = tpu.matmul %28, %27, %cst_23 {dimension_numbers = #tpu.dot_dimension_numbers<[1], [0], [0], [1], [0, 0, 1, 1], [], []>} : vector<32x64xbf16>, vector<64x128xbf16>, vector<32x128xf32> -> vector<32x128xf32>
    %30 = arith.addf %20, %29 : vector<32x128xf32>
    %c0_24 = arith.constant 0 : index
    %c0_25 = arith.constant 0 : index
    %c0_26 = arith.constant 0 : index
    %31 = vector.load %arg4[%c0_24, %c0_25, %c0_26] : memref<2x128x64xf32, #tpu.memory_space<vmem>>, vector<1x128x64xf32>
    %32 = vector.shape_cast %31 : vector<1x128x64xf32> to vector<128x64xf32>
    %33 = arith.truncf %30 : vector<32x128xf32> to vector<32x128xbf16>
    %34 = arith.truncf %32 : vector<128x64xf32> to vector<128x64xbf16>
    %cst_27 = arith.constant dense<0.000000e+00> : vector<32x64xf32>
    %35 = tpu.matmul %33, %34, %cst_27 {dimension_numbers = #tpu.dot_dimension_numbers<[1], [0], [0], [1], [0, 0, 1, 1], [], []>} : vector<32x128xbf16>, vector<128x64xbf16>, vector<32x64xf32> -> vector<32x64xf32>
    %c1_28 = arith.constant 1 : index
    %c0_29 = arith.constant 0 : index
    %c0_30 = arith.constant 0 : index
    %36 = vector.load %arg4[%c1_28, %c0_29, %c0_30] : memref<2x128x64xf32, #tpu.memory_space<vmem>>, vector<1x128x64xf32>
    %37 = vector.shape_cast %36 : vector<1x128x64xf32> to vector<128x64xf32>
    %38 = arith.truncf %30 : vector<32x128xf32> to vector<32x128xbf16>
    %39 = arith.truncf %37 : vector<128x64xf32> to vector<128x64xbf16>
    %cst_31 = arith.constant dense<0.000000e+00> : vector<32x64xf32>
    %40 = tpu.matmul %38, %39, %cst_31 {dimension_numbers = #tpu.dot_dimension_numbers<[1], [0], [0], [1], [0, 0, 1, 1], [], []>} : vector<32x128xbf16>, vector<128x64xbf16>, vector<32x64xf32> -> vector<32x64xf32>
    %41 = arith.maximumf %35, %40 : vector<32x64xf32>
    %c0_32 = arith.constant 0 : index
    %c0_33 = arith.constant 0 : index
    %c0_34 = arith.constant 0 : index
    %42 = vector.load %arg3[%c0_32, %c0_33, %c0_34] : memref<2x16x32xf32, #tpu.memory_space<vmem>>, vector<1x16x32xf32>
    %43 = vector.shape_cast %42 : vector<1x16x32xf32> to vector<16x32xf32>
    %44 = arith.truncf %43 : vector<16x32xf32> to vector<16x32xbf16>
    %45 = arith.truncf %41 : vector<32x64xf32> to vector<32x64xbf16>
    %cst_35 = arith.constant dense<0.000000e+00> : vector<16x64xf32>
    %46 = tpu.matmul %44, %45, %cst_35 {dimension_numbers = #tpu.dot_dimension_numbers<[1], [0], [0], [1], [0, 0, 1, 1], [], []>} : vector<16x32xbf16>, vector<32x64xbf16>, vector<16x64xf32> -> vector<16x64xf32>
    %c1_36 = arith.constant 1 : index
    %c0_37 = arith.constant 0 : index
    %c0_38 = arith.constant 0 : index
    %47 = vector.load %arg3[%c1_36, %c0_37, %c0_38] : memref<2x16x32xf32, #tpu.memory_space<vmem>>, vector<1x16x32xf32>
    %48 = vector.shape_cast %47 : vector<1x16x32xf32> to vector<16x32xf32>
    %49 = arith.truncf %48 : vector<16x32xf32> to vector<16x32xbf16>
    %50 = arith.truncf %41 : vector<32x64xf32> to vector<32x64xbf16>
    %cst_39 = arith.constant dense<0.000000e+00> : vector<16x64xf32>
    %51 = tpu.matmul %49, %50, %cst_39 {dimension_numbers = #tpu.dot_dimension_numbers<[1], [0], [0], [1], [0, 0, 1, 1], [], []>} : vector<16x32xbf16>, vector<32x64xbf16>, vector<16x64xf32> -> vector<16x64xf32>
    %52 = arith.maximumf %46, %51 : vector<16x64xf32>
    %53 = arith.truncf %52 : vector<16x64xf32> to vector<16x64xbf16>
    %54 = arith.truncf %1 : vector<64x64xf32> to vector<64x64xbf16>
    %cst_40 = arith.constant dense<0.000000e+00> : vector<16x64xf32>
    %55 = tpu.matmul %53, %54, %cst_40 {dimension_numbers = #tpu.dot_dimension_numbers<[1], [0], [0], [1], [0, 0, 1, 1], [], []>} : vector<16x64xbf16>, vector<64x64xbf16>, vector<16x64xf32> -> vector<16x64xf32>
    %cst_41 = arith.constant dense<0.000000e+00> : vector<64xf32>
    %56 = vector.multi_reduction <add>, %55, %cst_41 [0] : vector<16x64xf32> to vector<64xf32>
    %57 = vector.shape_cast %56 : vector<64xf32> to vector<1x64xf32>
    %cst_42 = arith.constant 7.812500e-03 : f32
    %58 = vector.broadcast %cst_42 : f32 to vector<1x64xf32>
    %59 = arith.mulf %57, %58 : vector<1x64xf32>
    %60 = vector.broadcast %59 : vector<1x64xf32> to vector<16x64xf32>
    %61 = arith.subf %52, %60 : vector<16x64xf32>
    %62 = arith.mulf %61, %61 : vector<16x64xf32>
    %63 = arith.truncf %62 : vector<16x64xf32> to vector<16x64xbf16>
    %64 = arith.truncf %1 : vector<64x64xf32> to vector<64x64xbf16>
    %cst_43 = arith.constant dense<0.000000e+00> : vector<16x64xf32>
    %65 = tpu.matmul %63, %64, %cst_43 {dimension_numbers = #tpu.dot_dimension_numbers<[1], [0], [0], [1], [0, 0, 1, 1], [], []>} : vector<16x64xbf16>, vector<64x64xbf16>, vector<16x64xf32> -> vector<16x64xf32>
    %cst_44 = arith.constant dense<0.000000e+00> : vector<64xf32>
    %66 = vector.multi_reduction <add>, %65, %cst_44 [0] : vector<16x64xf32> to vector<64xf32>
    %67 = vector.shape_cast %66 : vector<64xf32> to vector<1x64xf32>
    %cst_45 = arith.constant 7.812500e-03 : f32
    %68 = vector.broadcast %cst_45 : f32 to vector<1x64xf32>
    %69 = arith.mulf %67, %68 : vector<1x64xf32>
    %cst_46 = arith.constant 9.99999974E-6 : f32
    %70 = vector.broadcast %cst_46 : f32 to vector<1x64xf32>
    %71 = arith.addf %69, %70 : vector<1x64xf32>
    %72 = math.rsqrt %71 : vector<1x64xf32>
    %73 = vector.broadcast %72 : vector<1x64xf32> to vector<16x64xf32>
    %74 = arith.mulf %61, %73 : vector<16x64xf32>
    %c0_47 = arith.constant 0 : index
    %c0_48 = arith.constant 0 : index
    %75 = vector.load %arg9[%c0_47, %c0_48] : memref<3x64xf32, #tpu.memory_space<vmem>>, vector<1x64xf32>
    %76 = vector.broadcast %75 : vector<1x64xf32> to vector<16x64xf32>
    %77 = arith.mulf %74, %76 : vector<16x64xf32>
    %c0_49 = arith.constant 0 : index
    %c0_50 = arith.constant 0 : index
    %78 = vector.load %arg10[%c0_49, %c0_50] : memref<3x64xf32, #tpu.memory_space<vmem>>, vector<1x64xf32>
    %79 = vector.broadcast %78 : vector<1x64xf32> to vector<16x64xf32>
    %80 = arith.addf %77, %79 : vector<16x64xf32>
    %cst_51 = arith.constant 0.000000e+00 : f32
    %81 = vector.broadcast %cst_51 : f32 to vector<16x64xf32>
    %82 = arith.maximumf %80, %81 : vector<16x64xf32>
    %c0_52 = arith.constant 0 : index
    %c0_53 = arith.constant 0 : index
    %c0_54 = arith.constant 0 : index
    %83 = vector.load %arg5[%c0_52, %c0_53, %c0_54] : memref<3x16x16xf32, #tpu.memory_space<vmem>>, vector<1x16x16xf32>
    %84 = vector.shape_cast %83 : vector<1x16x16xf32> to vector<16x16xf32>
    %85 = arith.truncf %84 : vector<16x16xf32> to vector<16x16xbf16>
    %86 = arith.truncf %82 : vector<16x64xf32> to vector<16x64xbf16>
    %cst_55 = arith.constant dense<0.000000e+00> : vector<16x64xf32>
    %87 = tpu.matmul %85, %86, %cst_55 {dimension_numbers = #tpu.dot_dimension_numbers<[1], [0], [0], [1], [0, 0, 1, 1], [], []>} : vector<16x16xbf16>, vector<16x64xbf16>, vector<16x64xf32> -> vector<16x64xf32>
    %c0_56 = arith.constant 0 : index
    %c0_57 = arith.constant 0 : index
    %c0_58 = arith.constant 0 : index
    %88 = vector.load %arg6[%c0_56, %c0_57, %c0_58] : memref<3x64x64xbf16, #tpu.memory_space<vmem>>, vector<1x64x64xbf16>
    %89 = vector.shape_cast %88 : vector<1x64x64xbf16> to vector<64x64xbf16>
    %90 = arith.truncf %87 : vector<16x64xf32> to vector<16x64xbf16>
    %cst_59 = arith.constant dense<0.000000e+00> : vector<16x64xf32>
    %91 = tpu.matmul %90, %89, %cst_59 {dimension_numbers = #tpu.dot_dimension_numbers<[1], [0], [0], [1], [0, 0, 1, 1], [], []>} : vector<16x64xbf16>, vector<64x64xbf16>, vector<16x64xf32> -> vector<16x64xf32>
    %c1_60 = arith.constant 1 : index
    %c0_61 = arith.constant 0 : index
    %c0_62 = arith.constant 0 : index
    %92 = vector.load %arg5[%c1_60, %c0_61, %c0_62] : memref<3x16x16xf32, #tpu.memory_space<vmem>>, vector<1x16x16xf32>
    %93 = vector.shape_cast %92 : vector<1x16x16xf32> to vector<16x16xf32>
    %94 = arith.truncf %93 : vector<16x16xf32> to vector<16x16xbf16>
    %95 = arith.truncf %82 : vector<16x64xf32> to vector<16x64xbf16>
    %cst_63 = arith.constant dense<0.000000e+00> : vector<16x64xf32>
    %96 = tpu.matmul %94, %95, %cst_63 {dimension_numbers = #tpu.dot_dimension_numbers<[1], [0], [0], [1], [0, 0, 1, 1], [], []>} : vector<16x16xbf16>, vector<16x64xbf16>, vector<16x64xf32> -> vector<16x64xf32>
    %c1_64 = arith.constant 1 : index
    %c0_65 = arith.constant 0 : index
    %c0_66 = arith.constant 0 : index
    %97 = vector.load %arg6[%c1_64, %c0_65, %c0_66] : memref<3x64x64xbf16, #tpu.memory_space<vmem>>, vector<1x64x64xbf16>
    %98 = vector.shape_cast %97 : vector<1x64x64xbf16> to vector<64x64xbf16>
    %99 = arith.truncf %96 : vector<16x64xf32> to vector<16x64xbf16>
    %cst_67 = arith.constant dense<0.000000e+00> : vector<16x64xf32>
    %100 = tpu.matmul %99, %98, %cst_67 {dimension_numbers = #tpu.dot_dimension_numbers<[1], [0], [0], [1], [0, 0, 1, 1], [], []>} : vector<16x64xbf16>, vector<64x64xbf16>, vector<16x64xf32> -> vector<16x64xf32>
    %101 = arith.addf %91, %100 : vector<16x64xf32>
    %c2_68 = arith.constant 2 : index
    %c0_69 = arith.constant 0 : index
    %c0_70 = arith.constant 0 : index
    %102 = vector.load %arg5[%c2_68, %c0_69, %c0_70] : memref<3x16x16xf32, #tpu.memory_space<vmem>>, vector<1x16x16xf32>
    %103 = vector.shape_cast %102 : vector<1x16x16xf32> to vector<16x16xf32>
    %104 = arith.truncf %103 : vector<16x16xf32> to vector<16x16xbf16>
    %105 = arith.truncf %82 : vector<16x64xf32> to vector<16x64xbf16>
    %cst_71 = arith.constant dense<0.000000e+00> : vector<16x64xf32>
    %106 = tpu.matmul %104, %105, %cst_71 {dimension_numbers = #tpu.dot_dimension_numbers<[1], [0], [0], [1], [0, 0, 1, 1], [], []>} : vector<16x16xbf16>, vector<16x64xbf16>, vector<16x64xf32> -> vector<16x64xf32>
    %c2_72 = arith.constant 2 : index
    %c0_73 = arith.constant 0 : index
    %c0_74 = arith.constant 0 : index
    %107 = vector.load %arg6[%c2_72, %c0_73, %c0_74] : memref<3x64x64xbf16, #tpu.memory_space<vmem>>, vector<1x64x64xbf16>
    %108 = vector.shape_cast %107 : vector<1x64x64xbf16> to vector<64x64xbf16>
    %109 = arith.truncf %106 : vector<16x64xf32> to vector<16x64xbf16>
    %cst_75 = arith.constant dense<0.000000e+00> : vector<16x64xf32>
    %110 = tpu.matmul %109, %108, %cst_75 {dimension_numbers = #tpu.dot_dimension_numbers<[1], [0], [0], [1], [0, 0, 1, 1], [], []>} : vector<16x64xbf16>, vector<64x64xbf16>, vector<16x64xf32> -> vector<16x64xf32>
    %111 = arith.addf %101, %110 : vector<16x64xf32>
    %112 = arith.truncf %111 : vector<16x64xf32> to vector<16x64xbf16>
    %113 = arith.truncf %1 : vector<64x64xf32> to vector<64x64xbf16>
    %cst_76 = arith.constant dense<0.000000e+00> : vector<16x64xf32>
    %114 = tpu.matmul %112, %113, %cst_76 {dimension_numbers = #tpu.dot_dimension_numbers<[1], [0], [0], [1], [0, 0, 1, 1], [], []>} : vector<16x64xbf16>, vector<64x64xbf16>, vector<16x64xf32> -> vector<16x64xf32>
    %cst_77 = arith.constant dense<0.000000e+00> : vector<64xf32>
    %115 = vector.multi_reduction <add>, %114, %cst_77 [0] : vector<16x64xf32> to vector<64xf32>
    %116 = vector.shape_cast %115 : vector<64xf32> to vector<1x64xf32>
    %cst_78 = arith.constant 7.812500e-03 : f32
    %117 = vector.broadcast %cst_78 : f32 to vector<1x64xf32>
    %118 = arith.mulf %116, %117 : vector<1x64xf32>
    %119 = vector.broadcast %118 : vector<1x64xf32> to vector<16x64xf32>
    %120 = arith.subf %111, %119 : vector<16x64xf32>
    %121 = arith.mulf %120, %120 : vector<16x64xf32>
    %122 = arith.truncf %121 : vector<16x64xf32> to vector<16x64xbf16>
    %123 = arith.truncf %1 : vector<64x64xf32> to vector<64x64xbf16>
    %cst_79 = arith.constant dense<0.000000e+00> : vector<16x64xf32>
    %124 = tpu.matmul %122, %123, %cst_79 {dimension_numbers = #tpu.dot_dimension_numbers<[1], [0], [0], [1], [0, 0, 1, 1], [], []>} : vector<16x64xbf16>, vector<64x64xbf16>, vector<16x64xf32> -> vector<16x64xf32>
    %cst_80 = arith.constant dense<0.000000e+00> : vector<64xf32>
    %125 = vector.multi_reduction <add>, %124, %cst_80 [0] : vector<16x64xf32> to vector<64xf32>
    %126 = vector.shape_cast %125 : vector<64xf32> to vector<1x64xf32>
    %cst_81 = arith.constant 7.812500e-03 : f32
    %127 = vector.broadcast %cst_81 : f32 to vector<1x64xf32>
    %128 = arith.mulf %126, %127 : vector<1x64xf32>
    %cst_82 = arith.constant 9.99999974E-6 : f32
    %129 = vector.broadcast %cst_82 : f32 to vector<1x64xf32>
    %130 = arith.addf %128, %129 : vector<1x64xf32>
    %131 = math.rsqrt %130 : vector<1x64xf32>
    %132 = vector.broadcast %131 : vector<1x64xf32> to vector<16x64xf32>
    %133 = arith.mulf %120, %132 : vector<16x64xf32>
    %c1_83 = arith.constant 1 : index
    %c0_84 = arith.constant 0 : index
    %134 = vector.load %arg9[%c1_83, %c0_84] : memref<3x64xf32, #tpu.memory_space<vmem>>, vector<1x64xf32>
    %135 = vector.broadcast %134 : vector<1x64xf32> to vector<16x64xf32>
    %136 = arith.mulf %133, %135 : vector<16x64xf32>
    %c1_85 = arith.constant 1 : index
    %c0_86 = arith.constant 0 : index
    %137 = vector.load %arg10[%c1_85, %c0_86] : memref<3x64xf32, #tpu.memory_space<vmem>>, vector<1x64xf32>
    %138 = vector.broadcast %137 : vector<1x64xf32> to vector<16x64xf32>
    %139 = arith.addf %136, %138 : vector<16x64xf32>
    %cst_87 = arith.constant 0.000000e+00 : f32
    %140 = vector.broadcast %cst_87 : f32 to vector<16x64xf32>
    %141 = arith.maximumf %139, %140 : vector<16x64xf32>
    %c0_88 = arith.constant 0 : index
    %c0_89 = arith.constant 0 : index
    %c0_90 = arith.constant 0 : index
    %142 = vector.load %arg5[%c0_88, %c0_89, %c0_90] : memref<3x16x16xf32, #tpu.memory_space<vmem>>, vector<1x16x16xf32>
    %143 = vector.shape_cast %142 : vector<1x16x16xf32> to vector<16x16xf32>
    %144 = arith.truncf %143 : vector<16x16xf32> to vector<16x16xbf16>
    %145 = arith.truncf %141 : vector<16x64xf32> to vector<16x64xbf16>
    %cst_91 = arith.constant dense<0.000000e+00> : vector<16x64xf32>
    %146 = tpu.matmul %144, %145, %cst_91 {dimension_numbers = #tpu.dot_dimension_numbers<[1], [0], [0], [1], [0, 0, 1, 1], [], []>} : vector<16x16xbf16>, vector<16x64xbf16>, vector<16x64xf32> -> vector<16x64xf32>
    %c0_92 = arith.constant 0 : index
    %c0_93 = arith.constant 0 : index
    %c0_94 = arith.constant 0 : index
    %147 = vector.load %arg7[%c0_92, %c0_93, %c0_94] : memref<3x64x64xbf16, #tpu.memory_space<vmem>>, vector<1x64x64xbf16>
    %148 = vector.shape_cast %147 : vector<1x64x64xbf16> to vector<64x64xbf16>
    %149 = arith.truncf %146 : vector<16x64xf32> to vector<16x64xbf16>
    %cst_95 = arith.constant dense<0.000000e+00> : vector<16x64xf32>
    %150 = tpu.matmul %149, %148, %cst_95 {dimension_numbers = #tpu.dot_dimension_numbers<[1], [0], [0], [1], [0, 0, 1, 1], [], []>} : vector<16x64xbf16>, vector<64x64xbf16>, vector<16x64xf32> -> vector<16x64xf32>
    %c1_96 = arith.constant 1 : index
    %c0_97 = arith.constant 0 : index
    %c0_98 = arith.constant 0 : index
    %151 = vector.load %arg5[%c1_96, %c0_97, %c0_98] : memref<3x16x16xf32, #tpu.memory_space<vmem>>, vector<1x16x16xf32>
    %152 = vector.shape_cast %151 : vector<1x16x16xf32> to vector<16x16xf32>
    %153 = arith.truncf %152 : vector<16x16xf32> to vector<16x16xbf16>
    %154 = arith.truncf %141 : vector<16x64xf32> to vector<16x64xbf16>
    %cst_99 = arith.constant dense<0.000000e+00> : vector<16x64xf32>
    %155 = tpu.matmul %153, %154, %cst_99 {dimension_numbers = #tpu.dot_dimension_numbers<[1], [0], [0], [1], [0, 0, 1, 1], [], []>} : vector<16x16xbf16>, vector<16x64xbf16>, vector<16x64xf32> -> vector<16x64xf32>
    %c1_100 = arith.constant 1 : index
    %c0_101 = arith.constant 0 : index
    %c0_102 = arith.constant 0 : index
    %156 = vector.load %arg7[%c1_100, %c0_101, %c0_102] : memref<3x64x64xbf16, #tpu.memory_space<vmem>>, vector<1x64x64xbf16>
    %157 = vector.shape_cast %156 : vector<1x64x64xbf16> to vector<64x64xbf16>
    %158 = arith.truncf %155 : vector<16x64xf32> to vector<16x64xbf16>
    %cst_103 = arith.constant dense<0.000000e+00> : vector<16x64xf32>
    %159 = tpu.matmul %158, %157, %cst_103 {dimension_numbers = #tpu.dot_dimension_numbers<[1], [0], [0], [1], [0, 0, 1, 1], [], []>} : vector<16x64xbf16>, vector<64x64xbf16>, vector<16x64xf32> -> vector<16x64xf32>
    %160 = arith.addf %150, %159 : vector<16x64xf32>
    %c2_104 = arith.constant 2 : index
    %c0_105 = arith.constant 0 : index
    %c0_106 = arith.constant 0 : index
    %161 = vector.load %arg5[%c2_104, %c0_105, %c0_106] : memref<3x16x16xf32, #tpu.memory_space<vmem>>, vector<1x16x16xf32>
    %162 = vector.shape_cast %161 : vector<1x16x16xf32> to vector<16x16xf32>
    %163 = arith.truncf %162 : vector<16x16xf32> to vector<16x16xbf16>
    %164 = arith.truncf %141 : vector<16x64xf32> to vector<16x64xbf16>
    %cst_107 = arith.constant dense<0.000000e+00> : vector<16x64xf32>
    %165 = tpu.matmul %163, %164, %cst_107 {dimension_numbers = #tpu.dot_dimension_numbers<[1], [0], [0], [1], [0, 0, 1, 1], [], []>} : vector<16x16xbf16>, vector<16x64xbf16>, vector<16x64xf32> -> vector<16x64xf32>
    %c2_108 = arith.constant 2 : index
    %c0_109 = arith.constant 0 : index
    %c0_110 = arith.constant 0 : index
    %166 = vector.load %arg7[%c2_108, %c0_109, %c0_110] : memref<3x64x64xbf16, #tpu.memory_space<vmem>>, vector<1x64x64xbf16>
    %167 = vector.shape_cast %166 : vector<1x64x64xbf16> to vector<64x64xbf16>
    %168 = arith.truncf %165 : vector<16x64xf32> to vector<16x64xbf16>
    %cst_111 = arith.constant dense<0.000000e+00> : vector<16x64xf32>
    %169 = tpu.matmul %168, %167, %cst_111 {dimension_numbers = #tpu.dot_dimension_numbers<[1], [0], [0], [1], [0, 0, 1, 1], [], []>} : vector<16x64xbf16>, vector<64x64xbf16>, vector<16x64xf32> -> vector<16x64xf32>
    %170 = arith.addf %160, %169 : vector<16x64xf32>
    %171 = arith.truncf %170 : vector<16x64xf32> to vector<16x64xbf16>
    %172 = arith.truncf %1 : vector<64x64xf32> to vector<64x64xbf16>
    %cst_112 = arith.constant dense<0.000000e+00> : vector<16x64xf32>
    %173 = tpu.matmul %171, %172, %cst_112 {dimension_numbers = #tpu.dot_dimension_numbers<[1], [0], [0], [1], [0, 0, 1, 1], [], []>} : vector<16x64xbf16>, vector<64x64xbf16>, vector<16x64xf32> -> vector<16x64xf32>
    %cst_113 = arith.constant dense<0.000000e+00> : vector<64xf32>
    %174 = vector.multi_reduction <add>, %173, %cst_113 [0] : vector<16x64xf32> to vector<64xf32>
    %175 = vector.shape_cast %174 : vector<64xf32> to vector<1x64xf32>
    %cst_114 = arith.constant 7.812500e-03 : f32
    %176 = vector.broadcast %cst_114 : f32 to vector<1x64xf32>
    %177 = arith.mulf %175, %176 : vector<1x64xf32>
    %178 = vector.broadcast %177 : vector<1x64xf32> to vector<16x64xf32>
    %179 = arith.subf %170, %178 : vector<16x64xf32>
    %180 = arith.mulf %179, %179 : vector<16x64xf32>
    %181 = arith.truncf %180 : vector<16x64xf32> to vector<16x64xbf16>
    %182 = arith.truncf %1 : vector<64x64xf32> to vector<64x64xbf16>
    %cst_115 = arith.constant dense<0.000000e+00> : vector<16x64xf32>
    %183 = tpu.matmul %181, %182, %cst_115 {dimension_numbers = #tpu.dot_dimension_numbers<[1], [0], [0], [1], [0, 0, 1, 1], [], []>} : vector<16x64xbf16>, vector<64x64xbf16>, vector<16x64xf32> -> vector<16x64xf32>
    %cst_116 = arith.constant dense<0.000000e+00> : vector<64xf32>
    %184 = vector.multi_reduction <add>, %183, %cst_116 [0] : vector<16x64xf32> to vector<64xf32>
    %185 = vector.shape_cast %184 : vector<64xf32> to vector<1x64xf32>
    %cst_117 = arith.constant 7.812500e-03 : f32
    %186 = vector.broadcast %cst_117 : f32 to vector<1x64xf32>
    %187 = arith.mulf %185, %186 : vector<1x64xf32>
    %cst_118 = arith.constant 9.99999974E-6 : f32
    %188 = vector.broadcast %cst_118 : f32 to vector<1x64xf32>
    %189 = arith.addf %187, %188 : vector<1x64xf32>
    %190 = math.rsqrt %189 : vector<1x64xf32>
    %191 = vector.broadcast %190 : vector<1x64xf32> to vector<16x64xf32>
    %192 = arith.mulf %179, %191 : vector<16x64xf32>
    %c2_119 = arith.constant 2 : index
    %c0_120 = arith.constant 0 : index
    %193 = vector.load %arg9[%c2_119, %c0_120] : memref<3x64xf32, #tpu.memory_space<vmem>>, vector<1x64xf32>
    %194 = vector.broadcast %193 : vector<1x64xf32> to vector<16x64xf32>
    %195 = arith.mulf %192, %194 : vector<16x64xf32>
    %c2_121 = arith.constant 2 : index
    %c0_122 = arith.constant 0 : index
    %196 = vector.load %arg10[%c2_121, %c0_122] : memref<3x64xf32, #tpu.memory_space<vmem>>, vector<1x64xf32>
    %197 = vector.broadcast %196 : vector<1x64xf32> to vector<16x64xf32>
    %198 = arith.addf %195, %197 : vector<16x64xf32>
    %cst_123 = arith.constant 0.000000e+00 : f32
    %199 = vector.broadcast %cst_123 : f32 to vector<16x64xf32>
    %200 = arith.maximumf %198, %199 : vector<16x64xf32>
    %201 = arith.addf %200, %82 : vector<16x64xf32>
    %c0_124 = arith.constant 0 : index
    %c0_125 = arith.constant 0 : index
    %202 = vector.load %arg11[%c0_124, %c0_125] : memref<16x64xf32, #tpu.memory_space<vmem>>, vector<16x64xf32>
    tpu.vector_store %arg11[%c0_124, %c0_125], %201 {strides = array<i32>} : memref<16x64xf32, #tpu.memory_space<vmem>>, vector<16x64xf32>,
    return
  }
}

</mosaic_0001>

<bundles_post_ra>
// kernel: cust_block_forward.1
= control target key start
LH: loop header
LB: loop body
LE: loop exit
PB: predicated region body
PF: predicated region fallthrough
CT: control target
= control target key end

     0   :  { %vm59_vm0 = vcmask 261120   ;;  %vm222_vm1 = vcmask 523264   ;;  %vm2563_vm2 = vmmov 0   ;;  %vm907_vm3 = vcmask 130048   ;;  %s3156_s0 = inlined_call_operand.vmem [shape: f32[32,64], index: 0, kind: input, shape index: {}]   ;;  %s3157_s1 = inlined_call_operand.vmem [shape: f32[3,32,32], index: 1, kind: input, shape index: {}]   ;;  %s3158_s2 = inlined_call_operand.vmem [shape: bf16[3,64,128], index: 2, kind: input, shape index: {}]   ;;  %s3159_s4 = inlined_call_operand.vmem [shape: f32[2,128,64], index: 4, kind: input, shape index: {}]   ;;  %s3160_s3 = inlined_call_operand.vmem [shape: f32[2,16,32], index: 3, kind: input, shape index: {}]   ;;  %s3161_s8 = inlined_call_operand.vmem [shape: f32[64,64], index: 8, kind: input, shape index: {}]   ;;  %s3162_s6 = inlined_call_operand.vmem [shape: bf16[3,64,64], index: 6, kind: input, shape index: {}]   ;;  %s3163_s9 = inlined_call_operand.vmem [shape: f32[3,64], index: 9, kind: input, shape index: {}]   ;;  %s3164_s10 = inlined_call_operand.vmem [shape: f32[3,64], index: 10, kind: input, shape index: {}]   ;;  %s3165_s5 = inlined_call_operand.vmem [shape: f32[3,16,16], index: 5, kind: input, shape index: {}]   ;;  %s3166_s7 = inlined_call_operand.vmem [shape: bf16[3,64,64], index: 7, kind: input, shape index: {}]   ;;  %s3167_s11 = inlined_call_operand.vmem [shape: f32[16,64], index: 11, kind: output, shape index: {}]  }
   0x1   :  { %v39_v0 = vld [vmem:[%s3156_s0] sm:$0xff]  ;;  %v40_v1 = vld [vmem:[%s3156_s0 + $0x8] sm:$0xff]  ;;  %v41_v2 = vld [vmem:[%s3156_s0 + $0x10] sm:$0xff] }
   0x2   :  { %v57_v3 = vpack.c.bf16 %v40_v1, %v39_v0  ;;  %v42_v4 = vld [vmem:[%s3156_s0 + $0x18] sm:$0xff]  ;;  %v1920_v5 = vld [vmem:[%s3157_s1 + $0x20] sm:$0xff]  ;;  %v1921_v6 = vld [vmem:[%s3157_s1 + $0x28] sm:$0xff] }
   0x3   :  { %v58_v7 = vpack.c.bf16 %v42_v4, %v41_v2  ;;  %v130_v8 = vpack.c.bf16 %v1921_v6, %v1920_v5  ;;  %v51_v9 = vld [vmem:[%s3157_s1] sm:$0xff]  ;;  %v1922_v10 = vld [vmem:[%s3157_s1 + $0x30] sm:$0xff]  ;;  %v1923_v11 = vld [vmem:[%s3157_s1 + $0x38] sm:$0xff] }
   0x4   :  { %2206 = vmatprep.subr.bf16.mxu1 %v57_v3  ;;  %2198 = vmatprep.subr.bf16.mxu0 %v57_v3  ;;  %v52_v12 = vld [vmem:[%s3157_s1 + $0x8] sm:$0xff]  ;;  %v53_v14 = vld [vmem:[%s3157_s1 + $0x10] sm:$0xff]  ;;  %v54_v15 = vld [vmem:[%s3157_s1 + $0x18] sm:$0xff]  ;;  %v131_v19 = vpack.c.bf16 %v1923_v11, %v1922_v10 }
   0x5   :  { %2207 = vmatpush3.bf16.msra.mxu1 %v57_v3  ;;  %2210 = vmatprep.mubr.msk.bf16.mxu1 %vm59_vm0, %v130_v8  ;;  %v55_v13 = vpack.c.bf16 %v52_v12, %v51_v9  ;;  %v1946_v16 = vld [vmem:[%s3157_s1 + $0x40] sm:$0xff]  ;;  %v1947_v17 = vld [vmem:[%s3157_s1 + $0x48] sm:$0xff]  ;;  %v56_v20 = vpack.c.bf16 %v54_v15, %v53_v14  ;;  %v1948_v23 = vld [vmem:[%s3157_s1 + $0x50] sm:$0xff] }
   0x6   :  { %2208 = vmatprep.subr.bf16.mxu1 %v58_v7  ;;  %2199 = vmatpush3.bf16.msra.mxu0 %v57_v3  ;;  %v2520_v18 = vld [vmem:[%s3158_s2 + $0x20] sm:$0xff]   ;;  %v362_v21 = vpack.c.bf16 %v1947_v17, %v1946_v16  ;;  %v2521_v22 = vld [vmem:[%s3158_s2 + $0x28] sm:$0xff]   ;;  %v1949_v24 = vld [vmem:[%s3157_s1 + $0x58] sm:$0xff] }
   0x7   :  { %2200 = vmatprep.subr.bf16.mxu0 %v58_v7  ;;  %2202 = vmatprep.mubr.msk.bf16.mxu0 %vm59_vm0, %v55_v13  ;;  %v363_v25 = vpack.c.bf16 %v1949_v24, %v1948_v23  ;;  %v2522_v26 = vld [vmem:[%s3158_s2 + $0x30] sm:$0xff]   ;;  %v2523_v27 = vld [vmem:[%s3158_s2 + $0x38] sm:$0xff]   ;;  %v2524_v28 = vld [vmem:[%s3158_s2] sm:$0xff]  }
   0x8   :  { %v513_v29 = vld [vmem:[%s3159_s4] sm:$0xff]  ;;  %v514_v30 = vld [vmem:[%s3159_s4 + $0x8] sm:$0xff]  ;;  %v515_v31 = vld [vmem:[%s3159_s4 + $0x10] sm:$0xff] }
   0x9   :  { %2209 = vmatpush3.bf16.msra.mxu1 %v58_v7  ;;  %v531_v32 = vpack.c.bf16 %v514_v30, %v513_v29  ;;  %v516_v33 = vld [vmem:[%s3159_s4 + $0x18] sm:$0xff]  ;;  %v517_v35 = vld [vmem:[%s3159_s4 + $0x20] sm:$0xff]  ;;  %v518_v36 = vld [vmem:[%s3159_s4 + $0x28] sm:$0xff] }
   0xa   :  { %2201 = vmatpush3.bf16.msra.mxu0 %v58_v7  ;;  %2238 = vmatprep.subr.bf16.mxu1 %v57_v3  ;;  %v532_v34 = vpack.c.bf16 %v516_v33, %v515_v31  ;;  %v533_v37 = vpack.c.bf16 %v518_v36, %v517_v35  ;;  %v519_v38 = vld [vmem:[%s3159_s4 + $0x30] sm:$0xff]  ;;  %v520_v39 = vld [vmem:[%s3159_s4 + $0x38] sm:$0xff]  ;;  %v521_v41 = vld [vmem:[%s3159_s4 + $0x40] sm:$0xff] }
   0xb   :  { %2214 = vmatprep.subr.bf16.mxu0 %v2520_v18  ;;  %v534_v40 = vpack.c.bf16 %v520_v39, %v519_v38  ;;  %v522_v42 = vld [vmem:[%s3159_s4 + $0x48] sm:$0xff]  ;;  %v523_v44 = vld [vmem:[%s3159_s4 + $0x50] sm:$0xff]  ;;  %v524_v45 = vld [vmem:[%s3159_s4 + $0x58] sm:$0xff] }
   0xc   :  { %2211 = vmatmul.mubr.msk.bf16.vlgmr.msra.gmra.mrb[0].mxu1 %vm59_vm0, %v131_v19  ;;  %v535_v43 = vpack.c.bf16 %v522_v42, %v521_v41  ;;  %v536_v46 = vpack.c.bf16 %v524_v45, %v523_v44  ;;  %v525_v47 = vld [vmem:[%s3159_s4 + $0x60] sm:$0xff]  ;;  %v526_v48 = vld [vmem:[%s3159_s4 + $0x68] sm:$0xff]  ;;  %v2526_v0 = vld [vmem:[%s3158_s2 + $0x10] sm:$0xff]   ;;  %v2562_v44 = vmov 0.0  }
   0xd   :  { %2203 = vmatmul.mubr.msk.bf16.vlgmr.msra.gmra.mrb[0].mxu0 %vm59_vm0, %v56_v20  ;;  %2239 = vmatpush3.bf16.msra.mxu1 %v57_v3  ;;  %v537_v49 = vpack.c.bf16 %v526_v48, %v525_v47  ;;  %v2525_v61 = vld [vmem:[%s3158_s2 + $0x8] sm:$0xff]   ;;  %v2527_v6 = vld [vmem:[%s3158_s2 + $0x18] sm:$0xff]   ;;  %v2530_v9 = vld [vmem:[%s3158_s2 + $0x50] sm:$0xff]  }
   0xe   :  { %2240 = vmatprep.subr.bf16.mxu1 %v58_v7  ;;  %2242 = vmatprep.mubr.msk.bf16.mxu1 %vm59_vm0, %v362_v21  ;;  %v2529_v8 = vld [vmem:[%s3158_s2 + $0x48] sm:$0xff]   ;;  %v2531_v10 = vld [vmem:[%s3158_s2 + $0x58] sm:$0xff]   ;;  %v527_v11 = vld [vmem:[%s3159_s4 + $0x70] sm:$0xff] }
   0xf   :  { %2215 = vmatpush3.bf16.msra.mxu0 %v2520_v18  ;;  %v528_v12 = vld [vmem:[%s3159_s4 + $0x78] sm:$0xff]  ;;  %v1966_v14 = vld [vmem:[%s3159_s4 + $0x80] sm:$0xff]  ;;  %v1967_v15 = vld [vmem:[%s3159_s4 + $0x88] sm:$0xff] }
  0x10   :  { %2216 = vmatprep.subr.bf16.mxu0 %v2521_v22  ;;  %v538_v13 = vpack.c.bf16 %v528_v12, %v527_v11  ;;  %v605_v16 = vpack.c.bf16 %v1967_v15, %v1966_v14  ;;  %v1968_v20 = vld [vmem:[%s3159_s4 + $0x90] sm:$0xff]  ;;  %v1969_v21 = vld [vmem:[%s3159_s4 + $0x98] sm:$0xff]  ;;  %v1975_v33 = vld [vmem:[%s3159_s4 + $0xc8] sm:$0xff] }
  0x11   :  { %2241 = vmatpush3.bf16.msra.mxu1 %v58_v7  ;;  %v2528_v7 = vld [vmem:[%s3158_s2 + $0x40] sm:$0xff]   ;;  %v1972_v29 = vld [vmem:[%s3159_s4 + $0xb0] sm:$0xff]  ;;  %v1973_v30 = vld [vmem:[%s3159_s4 + $0xb8] sm:$0xff] }
  0x12   :  { %2258 = vmatprep.subr.bf16.mxu1 %v531_v32  ;;  %v608_v31 = vpack.c.bf16 %v1973_v30, %v1972_v29  ;;  %v1976_v35 = vld [vmem:[%s3159_s4 + $0xd0] sm:$0xff]  ;;  %v1977_v36 = vld [vmem:[%s3159_s4 + $0xd8] sm:$0xff]  ;;  %v1978_v38 = vld [vmem:[%s3159_s4 + $0xe0] sm:$0xff] }
  0x13   :  { %2217 = vmatpush3.bf16.msra.mxu0 %v2521_v22  ;;  %v1979_v39 = vld [vmem:[%s3159_s4 + $0xe8] sm:$0xff]  ;;  %v1980_v41 = vld [vmem:[%s3159_s4 + $0xf0] sm:$0xff]  ;;  %v1981_v42 = vld [vmem:[%s3159_s4 + $0xf8] sm:$0xff] }
  0x14   :  { %2243 = vmatmul.mubr.msk.bf16.vlgmr.msra.gmra.mrb[4].mxu1 %vm59_vm0, %v363_v25  ;;  %2218 = vmatprep.subr.bf16.mxu0 %v2522_v26  ;;  %v606_v25 = vpack.c.bf16 %v1969_v21, %v1968_v20  ;;  %v50_v11 = vld [vmem:[%s3161_s8 + $0x38] sm:$0xff] }
  0x15   :  { %2259 = vmatpush3.bf16.msra.mxu1 %v531_v32  ;;  %v1974_v32 = vld [vmem:[%s3159_s4 + $0xc0] sm:$0xff] }
  0x16   :  { %2260 = vmatprep.subr.bf16.mxu1 %v532_v34 }
  0x17   :  { %2219 = vmatpush3.bf16.msra.mxu0 %v2522_v26  ;;  %v1970_v26 = vld [vmem:[%s3159_s4 + $0xa0] sm:$0xff] }
  0x18   :  { %2220 = vmatprep.subr.bf16.mxu0 %v2523_v27 }
  0x19   :  { %2261 = vmatpush3.bf16.msra.mxu1 %v532_v34  ;;  %v609_v34 = vpack.c.bf16 %v1975_v33, %v1974_v32 }
  0x1a   :  { %2262 = vmatprep.subr.bf16.mxu1 %v533_v37 }
  0x1b   :  { %2221 = vmatpush3.bf16.msra.mxu0 %v2523_v27  ;;  %v1971_v27 = vld [vmem:[%s3159_s4 + $0xa8] sm:$0xff] }
  0x1c   :  { %2226 = vmatprep.subr.bf16.mxu0 %v2524_v28 }
  0x1d   :  { %2263 = vmatpush3.bf16.msra.mxu1 %v533_v37  ;;  %v610_v37 = vpack.c.bf16 %v1977_v36, %v1976_v35 }
  0x1e   :  { %2264 = vmatprep.subr.bf16.mxu1 %v534_v40 }
  0x21   :  { %2265 = vmatpush3.bf16.msra.mxu1 %v534_v40  ;;  %v611_v40 = vpack.c.bf16 %v1979_v39, %v1978_v38 }
  0x22   :  { %2266 = vmatprep.subr.bf16.mxu1 %v535_v43 }
  0x25   :  { %2267 = vmatpush3.bf16.msra.mxu1 %v535_v43  ;;  %v612_v43 = vpack.c.bf16 %v1981_v42, %v1980_v41 }
  0x26   :  { %2268 = vmatprep.subr.bf16.mxu1 %v536_v46 }
  0x29   :  { %2269 = vmatpush3.bf16.msra.mxu1 %v536_v46 }
  0x2a   :  { %2270 = vmatprep.subr.bf16.mxu1 %v537_v49 }
  0x2d   :  { %2271 = vmatpush3.bf16.msra.mxu1 %v537_v49 }
  0x2e   :  { %2272 = vmatprep.subr.bf16.mxu1 %v538_v13 }
  0x31   :  { %2273 = vmatpush3.bf16.msra.mxu1 %v538_v13 }
  0x32   :  { %2278 = vmatprep.subr.bf16.mxu1 %v605_v16 }
  0xdf   :  { %v2212_v50 = vpop.f32.mrb[0].mxu1 }
  0xe0   :  { %v172_v51 = vpop.f32.mrb[1].mxu1  ;;  %v2204_v52 = vpop.f32.mrb[0].mxu0 }
  0xe1   :  { %v2213_v53 = vpop.f32.mrb[2].mxu1  ;;  %v100_v54 = vpop.f32.mrb[1].mxu0 }
  0xe2   :  { %v197_v55 = vpack.c.bf16 %v2213_v53, %v2212_v50  ;;  %v175_v56 = vpop.f32.mrb[3].mxu1  ;;  %v2205_v57 = vpop.f32.mrb[2].mxu0 }
  0xe3   :  { %v196_v58 = vpack.c.bf16 %v175_v56, %v172_v51  ;;  %v124_v59 = vpack.c.bf16 %v2205_v57, %v2204_v52  ;;  %v103_v60 = vpop.f32.mrb[3].mxu0 }
  0xe4   :  { %v123_v62 = vpack.c.bf16 %v103_v60, %v100_v54  ;;  %v667_v60 = vld [vmem:[%s3160_s3 + $0x8] sm:$0xff] }
  0xe5   :  { %2222 = vmatprep.mubr.msk.bf16.mxu0 %vm222_vm1, %v196_v58 }
  0xe6   :  { %2223 = vmatmul.mubr.msk.bf16.vlgmr.msra.gmra.mrb[4].mxu0 %vm222_vm1, %v197_v55 }
  0xe7   :  { %2227 = vmatpush3.bf16.msra.mxu0 %v2524_v28  ;;  %2234 = vmatprep.mubr.msk.bf16.mxu0 %vm222_vm1, %v123_v62  ;;  %v2244_v63 = vpop.f32.mrb[4].mxu1  ;;  %v607_v28 = vpack.c.bf16 %v1971_v27, %v1970_v26  ;;  %v1983_v62 = vld [vmem:[%s3160_s3 + $0x10] sm:$0xff] }
  0xe8   :  { %2228 = vmatprep.subr.bf16.mxu0 %v2525_v61  ;;  %v404_v1 = vpop.f32.mrb[5].mxu1 }
  0xe9   :  { %v2245_v2 = vpop.f32.mrb[6].mxu1 }
  0xea   :  { %v429_v3 = vpack.c.bf16 %v2245_v2, %v2244_v63  ;;  %v407_v4 = vpop.f32.mrb[7].mxu1  ;;  %v1984_v63 = vld [vmem:[%s3160_s3 + $0x18] sm:$0xff]  ;;  %v44_v2 = vld [vmem:[%s3161_s8 + $0x8] sm:$0xff] }
  0xeb   :  { %2229 = vmatpush3.bf16.msra.mxu0 %v2525_v61  ;;  %v428_v5 = vpack.c.bf16 %v407_v4, %v404_v1  ;;  %v43_v1 = vld [vmem:[%s3161_s8] sm:$0xff]  ;;  %v45_v4 = vld [vmem:[%s3161_s8 + $0x10] sm:$0xff] }
  0xec   :  { %2230 = vmatprep.subr.bf16.mxu0 %v2526_v0 }
  0xef   :  { %2231 = vmatpush3.bf16.msra.mxu0 %v2526_v0  ;;  %v718_v0 = vpack.c.bf16 %v1984_v63, %v1983_v62 }
  0xf0   :  { %2232 = vmatprep.subr.bf16.mxu0 %v2527_v6 }
  0xf3   :  { %2233 = vmatpush3.bf16.msra.mxu0 %v2527_v6 }
  0xf4   :  { %2246 = vmatprep.subr.bf16.mxu0 %v2528_v7 }
  0xf6   :  { %2235 = vmatmul.mubr.msk.bf16.vlgmr.msra.gmra.mrb[4].mxu0 %vm222_vm1, %v124_v59  ;;  %v666_v59 = vld [vmem:[%s3160_s3] sm:$0xff] }
  0xf7   :  { %2247 = vmatpush3.bf16.msra.mxu0 %v2528_v7  ;;  %2254 = vmatprep.mubr.msk.bf16.mxu0 %vm222_vm1, %v428_v5  ;;  %v668_v61 = vpack.c.bf16 %v667_v60, %v666_v59  ;;  %v46_v5 = vld [vmem:[%s3161_s8 + $0x18] sm:$0xff]  ;;  %v47_v7 = vld [vmem:[%s3161_s8 + $0x20] sm:$0xff] }
  0xf8   :  { %2248 = vmatprep.subr.bf16.mxu0 %v2529_v8  ;;  %v2862_v6 = vpack.c.bf16 %v46_v5, %v45_v4 }
  0xfb   :  { %2249 = vmatpush3.bf16.msra.mxu0 %v2529_v8  ;;  %v48_v8 = vld [vmem:[%s3161_s8 + $0x28] sm:$0xff] }
  0xfc   :  { %2250 = vmatprep.subr.bf16.mxu0 %v2530_v9 }
  0xff   :  { %2251 = vmatpush3.bf16.msra.mxu0 %v2530_v9  ;;  %v2874_v9 = vpack.c.bf16 %v48_v8, %v47_v7 }
 0x100   :  { %2252 = vmatprep.subr.bf16.mxu0 %v2531_v10 }
 0x103   :  { %2253 = vmatpush3.bf16.msra.mxu0 %v2531_v10  ;;  %v49_v10 = vld [vmem:[%s3161_s8 + $0x30] sm:$0xff] }
 0x104   :  { %2298 = vmatprep.subr.bf16.mxu0 %v2562_v44  ;;  %v2886_v12 = vpack.c.bf16 %v50_v11, %v49_v10  ;;  %v903_v10 = vld [vmem:[%s3165_s5] sm:$0xff]  ;;  %v904_v11 = vld [vmem:[%s3165_s5 + $0x8] sm:$0xff] }
 0x106   :  { %2255 = vmatmul.mubr.msk.bf16.vlgmr.msra.gmra.mrb[4].mxu0 %vm222_vm1, %v429_v3  ;;  %v2850_v3 = vpack.c.bf16 %v44_v2, %v43_v1 }
 0x107   :  { %2302 = vmatprep.mubr.msk.bf16.mxu0 %vm2563_vm2, %v2562_v44 }
 0x1d9   :  { %v2256_v17 = vpop.f32.mrb[4].mxu0 }
 0x1da   :  { %v494_v18 = vpop.f32.mrb[5].mxu0 }
 0x1db   :  { %v2257_v19 = vpop.f32.mrb[6].mxu0 }
 0x1dc   :  { %v530_v22 = vpack.c.bf16 %v2257_v19, %v2256_v17  ;;  %v497_v23 = vpop.f32.mrb[7].mxu0 }
 0x1dd   :  { %v529_v24 = vpack.c.bf16 %v497_v23, %v494_v18 }
 0x1df   :  { %2274 = vmatprep.mubr.bf16.mxu1 %v529_v24 }
 0x1e0   :  { %2275 = vmatmul.mubr.bf16.vlgmr.msra.gmra.mrb[8].mxu1 %v530_v22 }
 0x1e1   :  { %2279 = vmatpush3.bf16.msra.mxu1 %v605_v16  ;;  %2294 = vmatprep.mubr.bf16.mxu1 %v529_v24 }
 0x1e2   :  { %2280 = vmatprep.subr.bf16.mxu1 %v606_v25 }
 0x1e5   :  { %2281 = vmatpush3.bf16.msra.mxu1 %v606_v25 }
 0x1e6   :  { %2282 = vmatprep.subr.bf16.mxu1 %v607_v28 }
 0x1e9   :  { %2283 = vmatpush3.bf16.msra.mxu1 %v607_v28 }
 0x1ea   :  { %2284 = vmatprep.subr.bf16.mxu1 %v608_v31 }
 0x1ed   :  { %2285 = vmatpush3.bf16.msra.mxu1 %v608_v31 }
 0x1ee   :  { %2286 = vmatprep.subr.bf16.mxu1 %v609_v34 }
 0x1f1   :  { %2287 = vmatpush3.bf16.msra.mxu1 %v609_v34 }
 0x1f2   :  { %2288 = vmatprep.subr.bf16.mxu1 %v610_v37 }
 0x1f5   :  { %2289 = vmatpush3.bf16.msra.mxu1 %v610_v37 }
 0x1f6   :  { %2290 = vmatprep.subr.bf16.mxu1 %v611_v40 }
 0x1f9   :  { %2291 = vmatpush3.bf16.msra.mxu1 %v611_v40 }
 0x1fa   :  { %2292 = vmatprep.subr.bf16.mxu1 %v612_v43 }
 0x1fd   :  { %2293 = vmatpush3.bf16.msra.mxu1 %v612_v43  ;;  %v2532_v43 = vld [vmem:[%s3162_s6 + $0x20] sm:$0xff]  }
 0x1fe   :  { %2326 = vmatprep.subr.bf16.mxu1 %v2562_v44 }
 0x200   :  { %2295 = vmatmul.mubr.bf16.vlgmr.msra.gmra.mrb[12].mxu1 %v530_v22 }
 0x201   :  { %2334 = vmatprep.mubr.msk.bf16.mxu1 %vm2563_vm2, %v2562_v44  ;;  %2327 = vmatpush3.bf16.msra.mxu1 %v2850_v3 }
 0x202   :  { %2328 = vmatprep.subr.bf16.mxu1 %v2562_v44 }
 0x205   :  { %2329 = vmatpush3.bf16.msra.mxu1 %v2862_v6 }
 0x206   :  { %2330 = vmatprep.subr.bf16.mxu1 %v2562_v44 }
 0x209   :  { %2331 = vmatpush3.bf16.msra.mxu1 %v2874_v9 }
 0x20a   :  { %2332 = vmatprep.subr.bf16.mxu1 %v2562_v44 }
 0x20d   :  { %2333 = vmatpush3.bf16.msra.mxu1 %v2886_v12 }
 0x20e   :  { %2350 = vmatprep.subr.bf16.mxu1 %v2562_v44 }
 0x2b3   :  { %v2276_v45 = vpop.f32.mrb[8].mxu1 }
 0x2b4   :  { %v573_v46 = vpop.f32.mrb[9].mxu1 }
 0x2b5   :  { %v2277_v47 = vpop.f32.mrb[10].mxu1 }
 0x2b6   :  { %v576_v48 = vpop.f32.mrb[11].mxu1 }
 0x2d3   :  { %v2296_v49 = vpop.f32.mrb[12].mxu1 }
 0x2d4   :  { %v664_v50 = vmax.f32 %v2276_v45, %v2296_v49  ;;  %v647_v51 = vpop.f32.mrb[13].mxu1 }
 0x2d5   :  { %v662_v52 = vmax.f32 %v573_v46, %v647_v51  ;;  %v2297_v53 = vpop.f32.mrb[14].mxu1 }
 0x2d6   :  { %v665_v54 = vmax.f32 %v2277_v47, %v2297_v53  ;;  %v650_v55 = vpop.f32.mrb[15].mxu1 }
 0x2d7   :  { %v663_v56 = vmax.f32 %v576_v48, %v650_v55 }
 0x2d8   :  { %v670_v57 = vpack.c.bf16 %v665_v54, %v664_v50 }
 0x2d9   :  { %v669_v58 = vpack.c.bf16 %v663_v56, %v662_v52 }
 0x2db   :  { %2299 = vmatpush3.bf16.msra.mxu0 %v669_v58 }
 0x2dc   :  { %2300 = vmatprep.subr.bf16.mxu0 %v2562_v44 }
 0x2df   :  { %2301 = vmatpush3.bf16.msra.mxu0 %v670_v57 }
 0x2e0   :  { %2306 = vmatprep.subr.bf16.mxu0 %v2562_v44 }
 0x2e2   :  { %2303 = vmatmul.mubr.msk.bf16.vlgmr.msra.gmra.mrb[8].mxu0 %vm59_vm0, %v668_v61  ;;  %v1988_v61 = vld [vmem:[%s3163_s9] ss:$0 sm:$0xff] }
 0x2e3   :  { %2307 = vmatpush3.bf16.msra.mxu0 %v669_v58  ;;  %2310 = vmatprep.mubr.msk.bf16.mxu0 %vm2563_vm2, %v2562_v44 }
 0x2e4   :  { %2308 = vmatprep.subr.bf16.mxu0 %v2562_v44 }
 0x2e7   :  { %2309 = vmatpush3.bf16.msra.mxu0 %v670_v57 }
 0x2e8   :  { %2314 = vmatprep.subr.bf16.mxu0 %v2562_v44 }
 0x2ea   :  { %2311 = vmatmul.mubr.msk.bf16.vlgmr.msra.gmra.mrb[12].mxu0 %vm59_vm0, %v718_v0  ;;  %v1989_v0 = vld [vmem:[%s3164_s10] ss:$0 sm:$0xff] }
 0x2eb   :  { %2322 = vmatprep.mubr.msk.bf16.mxu0 %vm2563_vm2, %v2562_v44  ;;  %2315 = vmatpush3.bf16.msra.mxu0 %v2850_v3 }
 0x2ec   :  { %2316 = vmatprep.subr.bf16.mxu0 %v2562_v44 }
 0x2ef   :  { %2317 = vmatpush3.bf16.msra.mxu0 %v2862_v6 }
 0x2f0   :  { %2318 = vmatprep.subr.bf16.mxu0 %v2562_v44 }
 0x2f3   :  { %2319 = vmatpush3.bf16.msra.mxu0 %v2874_v9 }
 0x2f4   :  { %2320 = vmatprep.subr.bf16.mxu0 %v2562_v44 }
 0x2f7   :  { %2321 = vmatpush3.bf16.msra.mxu0 %v2886_v12 }
 0x2f8   :  { %2338 = vmatprep.subr.bf16.mxu0 %v2562_v44 }
 0x3b5   :  { %v708_v13 = vpop.f32.mrb[8].mxu0 }
 0x3b6   :  { %v2304_v14 = vpop.f32.mrb[9].mxu0 }
 0x3b7   :  { %v711_v15 = vpop.f32.mrb[10].mxu0  ;;  %v2928_v14 = vpack.c.bf16 %v904_v11, %v903_v10 }
 0x3b8   :  { %v2305_v16 = vpop.f32.mrb[11].mxu0 }
 0x3b9   :  { %v1992_v16 = vld [vmem:[%s3165_s5 + $0x18] sm:$0xff] }
 0x3bd   :  { %v756_v17 = vpop.f32.mrb[12].mxu0 }
 0x3be   :  { %v763_v18 = vmax.f32 %v708_v13, %v756_v17  ;;  %v2312_v19 = vpop.f32.mrb[13].mxu0 }
 0x3bf   :  { %v759_v20 = vpop.f32.mrb[14].mxu0  ;;  %v2013_v19 = vld [vmem:[%s3165_s5 + $0x28] sm:$0xff] }
 0x3c0   :  { %v764_v21 = vmax.f32 %v711_v15, %v759_v20  ;;  %v2313_v22 = vpop.f32.mrb[15].mxu0  ;;  %v1991_v15 = vld [vmem:[%s3165_s5 + $0x10] sm:$0xff] }
 0x3c1   :  { %v2942_v17 = vpack.c.bf16 %v1992_v16, %v1991_v15  ;;  %v2534_v22 = vld [vmem:[%s3162_s6 + $0x30] sm:$0xff]  }
 0x3c2   :  { %v765_v23 = vpack.c.bf16 %v764_v21, %v763_v18 }
 0x3c4   :  { %2323 = vmatmul.mubr.msk.bf16.vlgmr.msra.gmra.mrb[16].mxu0 %vm222_vm1, %v765_v23  ;;  %v2535_v23 = vld [vmem:[%s3162_s6 + $0x38] sm:$0xff]  }
 0x3c5   :  { %2340 = vmatprep.mubr.msk.bf16.mxu0 %vm2563_vm2, %v2562_v44 }
 0x497   :  { %v807_v24 = vpop.f32.mrb[16].mxu0 }
 0x498   :  { %v2324_v25 = vpop.f32.mrb[17].mxu0  ;;  %v814_v27 = vsel %vm222_vm1, %v807_v24, 0.0 }
 0x499   :  { %v810_v26 = vpop.f32.mrb[18].mxu0 }
 0x49a   :  { %v815_v28 = vsel %vm222_vm1, %v810_v26, 0.0  ;;  %v2325_v29 = vpop.f32.mrb[19].mxu0 }
 0x49b   :  { %v816_v30 = vadd.f32 %v815_v28, %v814_v27 }
 0x49d   :  { %v817_v31 = vrot.slane %v816_v30, 4 }
 0x49f   :  { %v818_v32 = vadd.f32 %v817_v31, %v816_v30 }
 0x4a1   :  { %v819_v33 = vrot.slane %v818_v32, 2 }
 0x4a3   :  { %v820_v34 = vadd.f32 %v819_v33, %v818_v32  ;;  %v2536_v32 = vld [vmem:[%s3162_s6] sm:$0xff]  }
 0x4a5   :  { %v821_v35 = vrot.slane %v820_v34, 1 }
 0x4a7   :  { %v822_v36 = vadd.f32 %v821_v35, %v820_v34  ;;  %v2537_v35 = vld [vmem:[%s3162_s6 + $0x8] sm:$0xff]  }
 0x4a9   :  { %v823_v37 = vmul.f32 0.0078125, %v822_v36 }
 0x4ab   :  { %v824_v38 = vsub.f32 %v763_v18, %v823_v37  ;;  %v825_v39 = vsub.f32 %v764_v21, %v823_v37  ;;  %v2012_v18 = vld [vmem:[%s3165_s5 + $0x20] sm:$0xff]  ;;  %v2533_v21 = vld [vmem:[%s3162_s6 + $0x28] sm:$0xff]  }
 0x4ac   :  { %v2955_v20 = vpack.c.bf16 %v2013_v19, %v2012_v18 }
 0x4ad   :  { %v826_v40 = vmul.f32 %v824_v38, %v824_v38  ;;  %v827_v41 = vmul.f32 %v825_v39, %v825_v39 }
 0x4af   :  { %v828_v42 = vpack.c.bf16 %v827_v41, %v826_v40 }
 0x4b1   :  { %2335 = vmatmul.mubr.msk.bf16.vlgmr.msra.gmra.mrb[16].mxu1 %vm222_vm1, %v828_v42  ;;  %v2539_v42 = vld [vmem:[%s3162_s6 + $0x18] sm:$0xff]  }
 0x4b2   :  { %2358 = vmatprep.mubr.msk.bf16.mxu1 %vm2563_vm2, %v2562_v44  ;;  %2351 = vmatpush3.bf16.msra.mxu1 %v2532_v43  ;;  %v2540_v43 = vld [vmem:[%s3162_s6 + $0x40] sm:$0xff]  }
 0x4b3   :  { %2352 = vmatprep.subr.bf16.mxu1 %v2562_v44 }
 0x4b6   :  { %2353 = vmatpush3.bf16.msra.mxu1 %v2533_v21 }
 0x4b7   :  { %2354 = vmatprep.subr.bf16.mxu1 %v2562_v44 }
 0x4ba   :  { %2355 = vmatpush3.bf16.msra.mxu1 %v2534_v22 }
 0x4bb   :  { %2356 = vmatprep.subr.bf16.mxu1 %v2562_v44 }
 0x4be   :  { %2357 = vmatpush3.bf16.msra.mxu1 %v2535_v23 }
 0x4bf   :  { %2362 = vmatprep.subr.bf16.mxu1 %v2562_v44 }
 0x584   :  { %v866_v45 = vpop.f32.mrb[16].mxu1 }
 0x585   :  { %v2336_v46 = vpop.f32.mrb[17].mxu1  ;;  %v873_v48 = vsel %vm222_vm1, %v866_v45, 0.0  ;;  %v2541_v45 = vld [vmem:[%s3162_s6 + $0x48] sm:$0xff]  }
 0x586   :  { %v869_v47 = vpop.f32.mrb[18].mxu1  ;;  %v2542_v46 = vld [vmem:[%s3162_s6 + $0x50] sm:$0xff]  }
 0x587   :  { %v874_v49 = vsel %vm222_vm1, %v869_v47, 0.0  ;;  %v2337_v50 = vpop.f32.mrb[19].mxu1  ;;  %v2543_v47 = vld [vmem:[%s3162_s6 + $0x58] sm:$0xff]  }
 0x588   :  { %v875_v51 = vadd.f32 %v874_v49, %v873_v48 }
 0x58a   :  { %v876_v52 = vrot.slane %v875_v51, 4 }
 0x58c   :  { %v877_v53 = vadd.f32 %v876_v52, %v875_v51 }
 0x58e   :  { %v878_v54 = vrot.slane %v877_v53, 2 }
 0x590   :  { %v879_v55 = vadd.f32 %v878_v54, %v877_v53 }
 0x592   :  { %v880_v56 = vrot.slane %v879_v55, 1 }
 0x594   :  { %v881_v57 = vadd.f32 %v880_v56, %v879_v55 }
 0x596   :  { %v882_v58 = vmul.f32 0.0078125, %v881_v57 }
 0x598   :  { %v883_v59 = vadd.f32 1e-05, %v882_v58 }
 0x59a   :  { %2556 = vrsqrt.f32 %v883_v59 }
 0x5a4   :  { %v2557_v60 = vpop.eup %2556 }
 0x5a5   :  { %v885_v62 = vmul.f32 %v2557_v60, %v824_v38  ;;  %v886_v63 = vmul.f32 %v2557_v60, %v825_v39  ;;  %v2538_v38 = vld [vmem:[%s3162_s6 + $0x10] sm:$0xff]  }
 0x5a7   :  { %v892_v1 = vmul.f32 %v1988_v61, %v885_v62  ;;  %v893_v2 = vmul.f32 %v1988_v61, %v886_v63 }
 0x5a9   :  { %v2912_v4 = vadd.f32 %v1989_v0, %v892_v1  ;;  %v2914_v5 = vadd.f32 %v1989_v0, %v893_v2 }
 0x5ab   :  { %v901_v7 = vmax.f32 %v2912_v4, 0.0  ;;  %v902_v8 = vmax.f32 %v2914_v5, 0.0 }
 0x5ad   :  { %v906_v13 = vpack.c.bf16 %v902_v8, %v901_v7 }
 0x5af   :  { %2339 = vmatpush3.bf16.msra.mxu0 %v906_v13 }
 0x5b0   :  { %2344 = vmatprep.subr.bf16.mxu0 %v2562_v44 }
 0x5b2   :  { %2341 = vmatmul.mubr.msk.bf16.vlgmr.msra.gmra.mrb[20].mxu0 %vm907_vm3, %v2928_v14 }
 0x5b3   :  { %2345 = vmatpush3.bf16.msra.mxu0 %v906_v13  ;;  %2346 = vmatprep.mubr.msk.bf16.mxu0 %vm2563_vm2, %v2562_v44 }
 0x5b4   :  { %2374 = vmatprep.subr.bf16.mxu0 %v2562_v44 }
 0x5ba   :  { %2347 = vmatmul.mubr.msk.bf16.vlgmr.msra.gmra.mrb[24].mxu0 %vm907_vm3, %v2942_v17 }
 0x5bb   :  { %2375 = vmatpush3.bf16.msra.mxu0 %v906_v13  ;;  %2376 = vmatprep.mubr.msk.bf16.mxu0 %vm2563_vm2, %v2562_v44 }
 0x5bc   :  { %2392 = vmatprep.subr.bf16.mxu0 %v2562_v44 }
 0x5c2   :  { %2377 = vmatmul.mubr.msk.bf16.vlgmr.msra.gmra.mrb[28].mxu0 %vm907_vm3, %v2955_v20 }
 0x5c3   :  { %2393 = vmatpush3.bf16.msra.mxu0 %v2850_v3  ;;  %2400 = vmatprep.mubr.msk.bf16.mxu0 %vm2563_vm2, %v2562_v44 }
 0x5c4   :  { %2394 = vmatprep.subr.bf16.mxu0 %v2562_v44 }
 0x5c7   :  { %2395 = vmatpush3.bf16.msra.mxu0 %v2862_v6 }
 0x5c8   :  { %2396 = vmatprep.subr.bf16.mxu0 %v2562_v44 }
 0x5cb   :  { %2397 = vmatpush3.bf16.msra.mxu0 %v2874_v9 }
 0x5cc   :  { %2398 = vmatprep.subr.bf16.mxu0 %v2562_v44 }
 0x5cf   :  { %2399 = vmatpush3.bf16.msra.mxu0 %v2886_v12 }
 0x5d0   :  { %2404 = vmatprep.subr.bf16.mxu0 %v2562_v44 }
 0x685   :  { %v945_v24 = vpop.f32.mrb[20].mxu0 }
 0x686   :  { %v2342_v25 = vpop.f32.mrb[21].mxu0 }
 0x687   :  { %v948_v26 = vpop.f32.mrb[22].mxu0 }
 0x688   :  { %v960_v27 = vpack.c.bf16 %v948_v26, %v945_v24  ;;  %v2343_v28 = vpop.f32.mrb[23].mxu0 }
 0x68d   :  { %v1002_v29 = vpop.f32.mrb[24].mxu0 }
 0x68e   :  { %v2348_v30 = vpop.f32.mrb[25].mxu0 }
 0x68f   :  { %v1005_v31 = vpop.f32.mrb[26].mxu0 }
 0x690   :  { %v1018_v33 = vpack.c.bf16 %v1005_v31, %v1002_v29  ;;  %v2349_v34 = vpop.f32.mrb[27].mxu0 }
 0x692   :  { %2359 = vmatmul.mubr.msk.bf16.vlgmr.msra.gmra.mrb[20].mxu1 %vm222_vm1, %v1018_v33 }
 0x693   :  { %2363 = vmatpush3.bf16.msra.mxu1 %v2536_v32  ;;  %2370 = vmatprep.mubr.msk.bf16.mxu1 %vm2563_vm2, %v2562_v44 }
 0x694   :  { %2364 = vmatprep.subr.bf16.mxu1 %v2562_v44 }
 0x695   :  { %v1196_v36 = vpop.f32.mrb[28].mxu0 }
 0x696   :  { %v2378_v37 = vpop.f32.mrb[29].mxu0 }
 0x697   :  { %2365 = vmatpush3.bf16.msra.mxu1 %v2537_v35  ;;  %v1199_v39 = vpop.f32.mrb[30].mxu0  ;;  %v2030_v35 = vld [vmem:[%s3163_s9 + $0x1] ss:$0 sm:$0xff] }
 0x698   :  { %2366 = vmatprep.subr.bf16.mxu1 %v2562_v44  ;;  %v1212_v40 = vpack.c.bf16 %v1199_v39, %v1196_v36  ;;  %v2379_v41 = vpop.f32.mrb[31].mxu0 }
 0x69b   :  { %2367 = vmatpush3.bf16.msra.mxu1 %v2538_v38  ;;  %v2031_v38 = vld [vmem:[%s3164_s10 + $0x1] ss:$0 sm:$0xff] }
 0x69c   :  { %2368 = vmatprep.subr.bf16.mxu1 %v2562_v44 }
 0x69f   :  { %2369 = vmatpush3.bf16.msra.mxu1 %v2539_v42 }
 0x6a0   :  { %2380 = vmatprep.subr.bf16.mxu1 %v2562_v44 }
 0x6a2   :  { %2371 = vmatmul.mubr.msk.bf16.vlgmr.msra.gmra.mrb[20].mxu1 %vm222_vm1, %v960_v27 }
 0x6a3   :  { %2381 = vmatpush3.bf16.msra.mxu1 %v2540_v43  ;;  %2388 = vmatprep.mubr.msk.bf16.mxu1 %vm2563_vm2, %v2562_v44 }
 0x6a4   :  { %2382 = vmatprep.subr.bf16.mxu1 %v2562_v44 }
 0x6a7   :  { %2383 = vmatpush3.bf16.msra.mxu1 %v2541_v45 }
 0x6a8   :  { %2384 = vmatprep.subr.bf16.mxu1 %v2562_v44 }
 0x6ab   :  { %2385 = vmatpush3.bf16.msra.mxu1 %v2542_v46 }
 0x6ac   :  { %2386 = vmatprep.subr.bf16.mxu1 %v2562_v44 }
 0x6af   :  { %2387 = vmatpush3.bf16.msra.mxu1 %v2543_v47  ;;  %v2544_v47 = vld [vmem:[%s3166_s7 + $0x20] sm:$0xff]  }
 0x6b0   :  { %2422 = vmatprep.subr.bf16.mxu1 %v2562_v44 }
 0x6b2   :  { %2389 = vmatmul.mubr.msk.bf16.vlgmr.msra.gmra.mrb[20].mxu1 %vm222_vm1, %v1212_v40 }
 0x6b3   :  { %2424 = vmatprep.mubr.msk.bf16.mxu1 %vm2563_vm2, %v2562_v44 }
 0x785   :  { %v1274_v48 = vpop.f32.mrb[20].mxu1 }
 0x786   :  { %v2390_v49 = vpop.f32.mrb[21].mxu1 }
 0x787   :  { %v1277_v50 = vpop.f32.mrb[22].mxu1 }
 0x788   :  { %v1283_v51 = vpack.c.bf16 %v1277_v50, %v1274_v48  ;;  %v2391_v52 = vpop.f32.mrb[23].mxu1 }
 0x78a   :  { %2401 = vmatmul.mubr.msk.bf16.vlgmr.msra.gmra.mrb[32].mxu0 %vm222_vm1, %v1283_v51 }
 0x78b   :  { %2405 = vmatpush3.bf16.msra.mxu0 %v2850_v3  ;;  %2412 = vmatprep.mubr.msk.bf16.mxu0 %vm2563_vm2, %v2562_v44 }
 0x78c   :  { %2406 = vmatprep.subr.bf16.mxu0 %v2562_v44 }
 0x78f   :  { %2407 = vmatpush3.bf16.msra.mxu0 %v2862_v6 }
 0x790   :  { %2408 = vmatprep.subr.bf16.mxu0 %v2562_v44 }
 0x793   :  { %2409 = vmatpush3.bf16.msra.mxu0 %v2874_v9 }
 0x794   :  { %2410 = vmatprep.subr.bf16.mxu0 %v2562_v44 }
 0x797   :  { %2411 = vmatpush3.bf16.msra.mxu0 %v2886_v12 }
 0x798   :  { %2416 = vmatprep.subr.bf16.mxu0 %v2562_v44 }
 0x85d   :  { %v1321_v53 = vpop.f32.mrb[32].mxu0 }
 0x85e   :  { %v2402_v54 = vpop.f32.mrb[33].mxu0  ;;  %v1328_v56 = vsel %vm222_vm1, %v1321_v53, 0.0  ;;  %v2548_v53 = vld [vmem:[%s3166_s7] sm:$0xff]  }
 0x85f   :  { %v1324_v55 = vpop.f32.mrb[34].mxu0 }
 0x860   :  { %v1329_v57 = vsel %vm222_vm1, %v1324_v55, 0.0  ;;  %v2403_v58 = vpop.f32.mrb[35].mxu0 }
 0x861   :  { %v1330_v59 = vadd.f32 %v1329_v57, %v1328_v56 }
 0x863   :  { %v1331_v60 = vrot.slane %v1330_v59, 4 }
 0x865   :  { %v1332_v61 = vadd.f32 %v1331_v60, %v1330_v59  ;;  %v2549_v59 = vld [vmem:[%s3166_s7 + $0x8] sm:$0xff]  }
 0x867   :  { %v1333_v62 = vrot.slane %v1332_v61, 2 }
 0x869   :  { %v1334_v63 = vadd.f32 %v1333_v62, %v1332_v61  ;;  %v2550_v62 = vld [vmem:[%s3166_s7 + $0x10] sm:$0xff]  }
 0x86b   :  { %v1335_v0 = vrot.slane %v1334_v63, 1 }
 0x86d   :  { %v1336_v1 = vadd.f32 %v1335_v0, %v1334_v63 }
 0x86f   :  { %v1337_v2 = vmul.f32 0.0078125, %v1336_v1 }
 0x871   :  { %v1338_v10 = vsub.f32 %v1274_v48, %v1337_v2  ;;  %v1339_v11 = vsub.f32 %v1277_v50, %v1337_v2  ;;  %v2545_v48 = vld [vmem:[%s3166_s7 + $0x28] sm:$0xff]   ;;  %v2551_v2 = vld [vmem:[%s3166_s7 + $0x18] sm:$0xff]  }
 0x873   :  { %v1340_v13 = vmul.f32 %v1338_v10, %v1338_v10  ;;  %v1341_v15 = vmul.f32 %v1339_v11, %v1339_v11 }
 0x875   :  { %v1342_v16 = vpack.c.bf16 %v1341_v15, %v1340_v13  ;;  %v2554_v13 = vld [vmem:[%s3166_s7 + $0x50] sm:$0xff]   ;;  %v2555_v15 = vld [vmem:[%s3166_s7 + $0x58] sm:$0xff]  }
 0x877   :  { %2413 = vmatmul.mubr.msk.bf16.vlgmr.msra.gmra.mrb[36].mxu0 %vm222_vm1, %v1342_v16 }
 0x878   :  { %2418 = vmatprep.mubr.msk.bf16.mxu0 %vm2563_vm2, %v2562_v44 }
 0x94a   :  { %v1380_v18 = vpop.f32.mrb[36].mxu0 }
 0x94b   :  { %v2414_v19 = vpop.f32.mrb[37].mxu0  ;;  %v1387_v22 = vsel %vm222_vm1, %v1380_v18, 0.0 }
 0x94c   :  { %v1383_v21 = vpop.f32.mrb[38].mxu0 }
 0x94d   :  { %v1388_v23 = vsel %vm222_vm1, %v1383_v21, 0.0  ;;  %v2415_v24 = vpop.f32.mrb[39].mxu0 }
 0x94e   :  { %v1389_v25 = vadd.f32 %v1388_v23, %v1387_v22 }
 0x950   :  { %v1390_v26 = vrot.slane %v1389_v25, 4 }
 0x952   :  { %v1391_v27 = vadd.f32 %v1390_v26, %v1389_v25 }
 0x954   :  { %v1392_v28 = vrot.slane %v1391_v27, 2 }
 0x956   :  { %v1393_v29 = vadd.f32 %v1392_v28, %v1391_v27 }
 0x958   :  { %v1394_v30 = vrot.slane %v1393_v29, 1 }
 0x95a   :  { %v1395_v31 = vadd.f32 %v1394_v30, %v1393_v29 }
 0x95c   :  { %v1396_v32 = vmul.f32 0.0078125, %v1395_v31 }
 0x95e   :  { %v1397_v33 = vadd.f32 1e-05, %v1396_v32 }
 0x960   :  { %2558 = vrsqrt.f32 %v1397_v33 }
 0x96a   :  { %v2559_v34 = vpop.eup %2558 }
 0x96b   :  { %v1399_v36 = vmul.f32 %v2559_v34, %v1338_v10  ;;  %v1400_v37 = vmul.f32 %v2559_v34, %v1339_v11  ;;  %v2552_v10 = vld [vmem:[%s3166_s7 + $0x40] sm:$0xff]   ;;  %v2553_v11 = vld [vmem:[%s3166_s7 + $0x48] sm:$0xff]  }
 0x96d   :  { %v1406_v39 = vmul.f32 %v2030_v35, %v1399_v36  ;;  %v1407_v40 = vmul.f32 %v2030_v35, %v1400_v37 }
 0x96f   :  { %v1413_v41 = vadd.f32 %v2031_v38, %v1406_v39  ;;  %v1414_v42 = vadd.f32 %v2031_v38, %v1407_v40 }
 0x971   :  { %v1415_v43 = vmax.f32 %v1413_v41, 0.0  ;;  %v1416_v45 = vmax.f32 %v1414_v42, 0.0 }
 0x973   :  { %v1417_v46 = vpack.c.bf16 %v1416_v45, %v1415_v43 }
 0x975   :  { %2417 = vmatpush3.bf16.msra.mxu0 %v1417_v46  ;;  %2423 = vmatpush3.bf16.msra.mxu1 %v1417_v46 }
 0x976   :  { %2452 = vmatprep.subr.bf16.mxu1 %v2562_v44  ;;  %2428 = vmatprep.subr.bf16.mxu0 %v2562_v44 }
 0x978   :  { %2425 = vmatmul.mubr.msk.bf16.vlgmr.msra.gmra.mrb[24].mxu1 %vm907_vm3, %v2942_v17  ;;  %2419 = vmatmul.mubr.msk.bf16.vlgmr.msra.gmra.mrb[40].mxu0 %vm907_vm3, %v2928_v14  ;;  %v2546_v14 = vld [vmem:[%s3166_s7 + $0x30] sm:$0xff]   ;;  %v2547_v17 = vld [vmem:[%s3166_s7 + $0x38] sm:$0xff]  }
 0x979   :  { %2453 = vmatpush3.bf16.msra.mxu1 %v1417_v46  ;;  %2454 = vmatprep.mubr.msk.bf16.mxu1 %vm2563_vm2, %v2562_v44 }
 0x97a   :  { %2429 = vmatpush3.bf16.msra.mxu0 %v2544_v47  ;;  %2436 = vmatprep.mubr.msk.bf16.mxu0 %vm2563_vm2, %v2562_v44 }
 0x97b   :  { %2430 = vmatprep.subr.bf16.mxu0 %v2562_v44  ;;  %2470 = vmatprep.subr.bf16.mxu1 %v2562_v44 }
 0x97e   :  { %2431 = vmatpush3.bf16.msra.mxu0 %v2545_v48 }
 0x97f   :  { %2432 = vmatprep.subr.bf16.mxu0 %v2562_v44 }
 0x980   :  { %2455 = vmatmul.mubr.msk.bf16.vlgmr.msra.gmra.mrb[28].mxu1 %vm907_vm3, %v2955_v20 }
 0x981   :  { %2471 = vmatpush3.bf16.msra.mxu1 %v2850_v3  ;;  %2478 = vmatprep.mubr.msk.bf16.mxu1 %vm2563_vm2, %v2562_v44 }
 0x982   :  { %2433 = vmatpush3.bf16.msra.mxu0 %v2546_v14  ;;  %2472 = vmatprep.subr.bf16.mxu1 %v2562_v44 }
 0x983   :  { %2434 = vmatprep.subr.bf16.mxu0 %v2562_v44 }
 0x985   :  { %2473 = vmatpush3.bf16.msra.mxu1 %v2862_v6 }
 0x986   :  { %2474 = vmatprep.subr.bf16.mxu1 %v2562_v44  ;;  %2435 = vmatpush3.bf16.msra.mxu0 %v2547_v17 }
 0x987   :  { %2440 = vmatprep.subr.bf16.mxu0 %v2562_v44 }
 0x989   :  { %2475 = vmatpush3.bf16.msra.mxu1 %v2874_v9 }
 0x98a   :  { %2476 = vmatprep.subr.bf16.mxu1 %v2562_v44 }
 0x98d   :  { %2477 = vmatpush3.bf16.msra.mxu1 %v2886_v12 }
 0x98e   :  { %2482 = vmatprep.subr.bf16.mxu1 %v2562_v44 }
 0xa4b   :  { %v1502_v20 = vpop.f32.mrb[24].mxu1  ;;  %v1452_v49 = vpop.f32.mrb[40].mxu0 }
 0xa4c   :  { %v2426_v50 = vpop.f32.mrb[25].mxu1  ;;  %v2420_v51 = vpop.f32.mrb[41].mxu0 }
 0xa4d   :  { %v1505_v52 = vpop.f32.mrb[26].mxu1  ;;  %v1455_v54 = vpop.f32.mrb[42].mxu0  ;;  %v2068_v51 = vld [vmem:[%s3163_s9 + $0x2] ss:$0 sm:$0xff] }
 0xa4e   :  { %v1518_v55 = vpack.c.bf16 %v1505_v52, %v1502_v20  ;;  %v2427_v56 = vpop.f32.mrb[27].mxu1  ;;  %v1467_v57 = vpack.c.bf16 %v1455_v54, %v1452_v49  ;;  %v2421_v58 = vpop.f32.mrb[43].mxu0  ;;  %v2069_v54 = vld [vmem:[%s3164_s10 + $0x2] ss:$0 sm:$0xff] }
 0xa50   :  { %2437 = vmatmul.mubr.msk.bf16.vlgmr.msra.gmra.mrb[44].mxu0 %vm222_vm1, %v1518_v55 }
 0xa51   :  { %2441 = vmatpush3.bf16.msra.mxu0 %v2548_v53  ;;  %2448 = vmatprep.mubr.msk.bf16.mxu0 %vm2563_vm2, %v2562_v44 }
 0xa52   :  { %2442 = vmatprep.subr.bf16.mxu0 %v2562_v44 }
 0xa53   :  { %v1689_v60 = vpop.f32.mrb[28].mxu1 }
 0xa54   :  { %v2456_v61 = vpop.f32.mrb[29].mxu1 }
 0xa55   :  { %2443 = vmatpush3.bf16.msra.mxu0 %v2549_v59  ;;  %v1692_v63 = vpop.f32.mrb[30].mxu1 }
 0xa56   :  { %2444 = vmatprep.subr.bf16.mxu0 %v2562_v44  ;;  %v1705_v0 = vpack.c.bf16 %v1692_v63, %v1689_v60  ;;  %v2457_v1 = vpop.f32.mrb[31].mxu1 }
 0xa59   :  { %2445 = vmatpush3.bf16.msra.mxu0 %v2550_v62 }
 0xa5a   :  { %2446 = vmatprep.subr.bf16.mxu0 %v2562_v44 }
 0xa5d   :  { %2447 = vmatpush3.bf16.msra.mxu0 %v2551_v2 }
 0xa5e   :  { %2458 = vmatprep.subr.bf16.mxu0 %v2562_v44 }
 0xa60   :  { %2449 = vmatmul.mubr.msk.bf16.vlgmr.msra.gmra.mrb[44].mxu0 %vm222_vm1, %v1467_v57 }
 0xa61   :  { %2459 = vmatpush3.bf16.msra.mxu0 %v2552_v10  ;;  %2466 = vmatprep.mubr.msk.bf16.mxu0 %vm2563_vm2, %v2562_v44 }
 0xa62   :  { %2460 = vmatprep.subr.bf16.mxu0 %v2562_v44 }
 0xa65   :  { %2461 = vmatpush3.bf16.msra.mxu0 %v2553_v11 }
 0xa66   :  { %2462 = vmatprep.subr.bf16.mxu0 %v2562_v44 }
 0xa69   :  { %2463 = vmatpush3.bf16.msra.mxu0 %v2554_v13 }
 0xa6a   :  { %2464 = vmatprep.subr.bf16.mxu0 %v2562_v44 }
 0xa6d   :  { %2465 = vmatpush3.bf16.msra.mxu0 %v2555_v15 }
 0xa70   :  { %2467 = vmatmul.mubr.msk.bf16.vlgmr.msra.gmra.mrb[44].mxu0 %vm222_vm1, %v1705_v0 }
 0xb43   :  { %v1767_v16 = vpop.f32.mrb[44].mxu0 }
 0xb44   :  { %v2468_v18 = vpop.f32.mrb[45].mxu0 }
 0xb45   :  { %v1770_v19 = vpop.f32.mrb[46].mxu0 }
 0xb46   :  { %v1776_v21 = vpack.c.bf16 %v1770_v19, %v1767_v16  ;;  %v2469_v22 = vpop.f32.mrb[47].mxu0 }
 0xb48   :  { %2479 = vmatmul.mubr.msk.bf16.vlgmr.msra.gmra.mrb[32].mxu1 %vm222_vm1, %v1776_v21 }
 0xb49   :  { %2483 = vmatpush3.bf16.msra.mxu1 %v2850_v3  ;;  %2490 = vmatprep.mubr.msk.bf16.mxu1 %vm2563_vm2, %v2562_v44 }
 0xb4a   :  { %2484 = vmatprep.subr.bf16.mxu1 %v2562_v44 }
 0xb4d   :  { %2485 = vmatpush3.bf16.msra.mxu1 %v2862_v6 }
 0xb4e   :  { %2486 = vmatprep.subr.bf16.mxu1 %v2562_v44 }
 0xb51   :  { %2487 = vmatpush3.bf16.msra.mxu1 %v2874_v9 }
 0xb52   :  { %2488 = vmatprep.subr.bf16.mxu1 %v2562_v44 }
 0xb55   :  { %2489 = vmatpush3.bf16.msra.mxu1 %v2886_v12 }
 0xc1b   :  { %v1814_v23 = vpop.f32.mrb[32].mxu1 }
 0xc1c   :  { %v2480_v24 = vpop.f32.mrb[33].mxu1  ;;  %v1821_v3 = vsel %vm222_vm1, %v1814_v23, 0.0 }
 0xc1d   :  { %v1817_v25 = vpop.f32.mrb[34].mxu1 }
 0xc1e   :  { %v1822_v26 = vsel %vm222_vm1, %v1817_v25, 0.0  ;;  %v2481_v27 = vpop.f32.mrb[35].mxu1 }
 0xc1f   :  { %v1823_v28 = vadd.f32 %v1822_v26, %v1821_v3 }
 0xc21   :  { %v1824_v29 = vrot.slane %v1823_v28, 4 }
 0xc23   :  { %v1825_v30 = vadd.f32 %v1824_v29, %v1823_v28 }
 0xc25   :  { %v1826_v6 = vrot.slane %v1825_v30, 2 }
 0xc27   :  { %v1827_v31 = vadd.f32 %v1826_v6, %v1825_v30 }
 0xc29   :  { %v1828_v32 = vrot.slane %v1827_v31, 1 }
 0xc2b   :  { %v1829_v33 = vadd.f32 %v1828_v32, %v1827_v31 }
 0xc2d   :  { %v1830_v9 = vmul.f32 0.0078125, %v1829_v33 }
 0xc2f   :  { %v1831_v34 = vsub.f32 %v1767_v16, %v1830_v9  ;;  %v1832_v44 = vsub.f32 %v1770_v19, %v1830_v9 }
 0xc31   :  { %v1833_v35 = vmul.f32 %v1831_v34, %v1831_v34  ;;  %v1834_v12 = vmul.f32 %v1832_v44, %v1832_v44 }
 0xc33   :  { %v1835_v36 = vpack.c.bf16 %v1834_v12, %v1833_v35 }
 0xc35   :  { %2491 = vmatmul.mubr.msk.bf16.vlgmr.msra.gmra.mrb[36].mxu1 %vm222_vm1, %v1835_v36 }
 0xd08   :  { %v1873_v37 = vpop.f32.mrb[36].mxu1 }
 0xd09   :  { %v2492_v38 = vpop.f32.mrb[37].mxu1  ;;  %v1880_v40 = vsel %vm222_vm1, %v1873_v37, 0.0 }
 0xd0a   :  { %v1876_v39 = vpop.f32.mrb[38].mxu1 }
 0xd0b   :  { %v1881_v41 = vsel %vm222_vm1, %v1876_v39, 0.0  ;;  %v2493_v42 = vpop.f32.mrb[39].mxu1 }
 0xd0c   :  { %v1882_v43 = vadd.f32 %v1881_v41, %v1880_v40 }
 0xd0e   :  { %v1883_v45 = vrot.slane %v1882_v43, 4 }
 0xd10   :  { %v1884_v46 = vadd.f32 %v1883_v45, %v1882_v43 }
 0xd12   :  { %v1885_v47 = vrot.slane %v1884_v46, 2 }
 0xd14   :  { %v1886_v48 = vadd.f32 %v1885_v47, %v1884_v46 }
 0xd16   :  { %v1887_v14 = vrot.slane %v1886_v48, 1 }
 0xd18   :  { %v1888_v17 = vadd.f32 %v1887_v14, %v1886_v48 }
 0xd1a   :  { %v1889_v20 = vmul.f32 0.0078125, %v1888_v17 }
 0xd1c   :  { %v1890_v49 = vadd.f32 1e-05, %v1889_v20 }
 0xd1e   :  { %2560 = vrsqrt.f32 %v1890_v49 }
 0xd28   :  { %v2561_v50 = vpop.eup %2560 }
 0xd29   :  { %v1892_v52 = vmul.f32 %v2561_v50, %v1831_v34  ;;  %v1893_v53 = vmul.f32 %v2561_v50, %v1832_v44 }
 0xd2b   :  { %v1899_v55 = vmul.f32 %v2068_v51, %v1892_v52  ;;  %v1900_v56 = vmul.f32 %v2068_v51, %v1893_v53 }
 0xd2d   :  { %v1906_v57 = vadd.f32 %v2069_v54, %v1899_v55  ;;  %v1907_v58 = vadd.f32 %v2069_v54, %v1900_v56 }
 0xd2f   :  { %v1908_v59 = vmax.f32 %v1906_v57, 0.0  ;;  %v1909_v60 = vmax.f32 %v1907_v58, 0.0 }
 0xd31   :  { %v1910_v61 = vadd.f32 %v1908_v59, %v901_v7  ;;  %v1911_v62 = vadd.f32 %v1909_v60, %v902_v8 }
 0xd33   :  { %1912 = vst.msk [vmem:[%s3167_s11] sm:$0xff] %vm222_vm1, %v1910_v61  ;;  %1913 = vst.msk [vmem:[%s3167_s11 + $0x8] sm:$0xff] %vm222_vm1, %v1911_v62 }

</bundles_post_ra>
